<compile_context>
chip_gen: v6e
topology: v6e:2x2x1
jax: 0.10.0
libtpu: 0.0.40
codegen_flags: <defaults>
</compile_context>

<pallas_src>
import functools

import jax
import jax.numpy as jnp
import numpy as np
from jax.experimental import pallas as pl
from jax.experimental.pallas import tpu as pltpu


# --------------------------------------------------------------------------- #
# helpers
# --------------------------------------------------------------------------- #
def _pick_hw_tile(hw, t, c, requested=None, budget_bytes=16 * 1024 * 1024):
    """Largest multiple of 128 that divides hw, fits the VMEM budget for the
    pass-2 working set (in + out blocks, double-buffered, f32), and is <=
    `requested` (if given).  Falls back to the full extent when hw % 128 != 0
    (full-extent blocks are always legal)."""
    if hw % 128 != 0:
        return hw
    per_hw_elem = 2 * 2 * 4 * t * c            # (in+out) * 2 buffers * 4 B * T*C
    cap = max(128, budget_bytes // max(per_hw_elem, 1))
    if requested is not None:
        cap = min(cap, max(requested, 128))
    cap = min(cap, hw)
    tile = max(128, (cap // 128) * 128)
    while hw % tile != 0:
        tile -= 128
    return tile


# --------------------------------------------------------------------------- #
# Pass 1: progressive temporal chain + global average pool (fea_s only)
# --------------------------------------------------------------------------- #
def pool_kernel(x_ref, w_ref, b_ref, s_ref, *, branchs, inv_norm):
    # x_ref : (1, T, C, HWt)     input tile (T leading, C sublanes, HW lanes)
    # w_ref : (branchs, 3, C, 1) depth-wise temporal conv taps
    # b_ref : (branchs, C, 1)    conv bias
    # s_ref : (1, C, 1)          pooled sum, revisited/accumulated over hw axis
    hw_i = pl.program_id(1)
    T = x_ref.shape[1]
    C, HWt = x_ref.shape[2], x_ref.shape[3]

    @pl.when(hw_i == 0)
    def _init():
        s_ref[...] = jnp.zeros_like(s_ref)

    # progressive depth-wise temporal conv (k=3, zero pad) + ReLU, branchs deep.
    fea = [x_ref[0, t].astype(jnp.float32) for t in range(T)]   # T x (C, HWt)
    tile_sum = jnp.zeros((C, HWt), jnp.float32)
    for i in range(branchs):
        w0 = w_ref[i, 0]            # (C, 1) -> lane broadcast
        w1 = w_ref[i, 1]
        w2 = w_ref[i, 2]
        bb = b_ref[i]
        prev_old = None
        for t in range(T):
            cur_old = fea[t]
            y = w1 * cur_old + bb
            if prev_old is not None:
                y = y + w0 * prev_old
            if t + 1 < T:
                y = y + w2 * fea[t + 1]
            f = jnp.maximum(y, 0.0)
            tile_sum = tile_sum + f
            fea[t] = f              # in-place update keeps live set ~T+2 tiles
            prev_old = cur_old

    # accumulate partial pooled sum (reduce lanes, keep channel on sublanes)
    s_ref[0] += jnp.sum(tile_sum, axis=-1, keepdims=True)       # (C, 1)

    @pl.when(hw_i == pl.num_programs(1) - 1)
    def _finalize():
        s_ref[...] = s_ref[...] * inv_norm


# --------------------------------------------------------------------------- #
# Pass 2: recompute progressive chain per tile + attention-weighted fusion
# --------------------------------------------------------------------------- #
def fuse_kernel(x_ref, w_ref, b_ref, a_ref, o_ref, *, branchs):
    # x_ref : (1, T, C, HWt)
    # a_ref : (1, branchs, C, 1)   softmaxed attention (per sample, per channel)
    # o_ref : (1, T, C, HWt)       fused output, already in (T, C, HW) layout
    T = x_ref.shape[1]

    fea = [x_ref[0, t].astype(jnp.float32) for t in range(T)]
    acc = [None] * T
    for i in range(branchs):
        w0 = w_ref[i, 0]
        w1 = w_ref[i, 1]
        w2 = w_ref[i, 2]
        bb = b_ref[i]
        a_i = a_ref[0, i]                                       # (C, 1)
        prev_old = None
        for t in range(T):
            cur_old = fea[t]
            y = w1 * cur_old + bb
            if prev_old is not None:
                y = y + w0 * prev_old
            if t + 1 < T:
                y = y + w2 * fea[t + 1]
            f = jnp.maximum(y, 0.0)
            fea[t] = f
            prev_old = cur_old
            c = a_i * f
            acc[t] = c if acc[t] is None else acc[t] + c
        del prev_old

    for t in range(T):
        o_ref[0, t] = acc[t].astype(o_ref.dtype)


# --------------------------------------------------------------------------- #
# Wrapper
# --------------------------------------------------------------------------- #
def competitive_progressive_temporal_module(x, params, *, branchs, gamma=1.0,
                                            hw_tile=None):
    # x: (N, C, T, H, W)  -- NCTHW, exactly like the PyTorch module input.
    N, C, T, H, W = x.shape
    HW = H * W
    hw_t = _pick_hw_tile(HW, T, C, hw_tile)
    n_hw = HW // hw_t

    x_k = jnp.transpose(x, (0, 2, 1, 3, 4)).reshape(N, T, C, HW)

    wconv = params["wconv"][..., None]          # (br, 3, C, 1)
    bconv = params["bconv"][..., None]          # (br, C, 1)

    cparams_pool = pltpu.CompilerParams(
        dimension_semantics=("parallel", "arbitrary"),
        vmem_limit_bytes=32 * 1024 * 1024)
    cparams_fuse = pltpu.CompilerParams(
        dimension_semantics=("parallel", "parallel"),
        vmem_limit_bytes=32 * 1024 * 1024)

    inv_norm = 1.0 / float(branchs * T * HW)

    # ---- pass 1: progressive chain + pooled fea_s (no pro_feas to HBM) -----
    fea_s = pl.pallas_call(
        functools.partial(pool_kernel, branchs=branchs, inv_norm=inv_norm),
        out_shape=jax.ShapeDtypeStruct((N, C, 1), jnp.float32),
        grid=(N, n_hw),
        in_specs=[
            pl.BlockSpec((1, T, C, hw_t), lambda n, h: (n, 0, 0, h)),
            pl.BlockSpec((branchs, 3, C, 1), lambda n, h: (0, 0, 0, 0)),
            pl.BlockSpec((branchs, C, 1), lambda n, h: (0, 0, 0)),
        ],
        out_specs=pl.BlockSpec((1, C, 1), lambda n, h: (n, 0, 0)),
        compiler_params=cparams_pool,
    )(x_k, wconv, bconv)

    # ---- attention head in plain XLA (matmuls far below MXU tile size) -----
    d = params["w1"].shape[1]
    h = fea_s[:, :, 0] @ params["w1"] + params["b1"]
    h = h * params["bn_scale"] + params["bn_bias"]        # folded BN (eval)
    h = jnp.maximum(h, 0.0)
    w2_cat = jnp.transpose(params["w2"], (1, 0, 2)).reshape(d, branchs * C)
    logits = (h @ w2_cat + params["b2"].reshape(1, branchs * C))
    logits = logits.reshape(N, branchs, C)
    attn = jax.nn.softmax(gamma * logits, axis=1)          # (N, br, C)

    # ---- pass 2: recompute chain per tile + competitive fusion -------------
    fused = pl.pallas_call(
        functools.partial(fuse_kernel, branchs=branchs),
        out_shape=jax.ShapeDtypeStruct((N, T, C, HW), x.dtype),
        grid=(N, n_hw),
        in_specs=[
            pl.BlockSpec((1, T, C, hw_t), lambda n, h: (n, 0, 0, h)),
            pl.BlockSpec((branchs, 3, C, 1), lambda n, h: (0, 0, 0, 0)),
            pl.BlockSpec((branchs, C, 1), lambda n, h: (0, 0, 0)),
            pl.BlockSpec((1, branchs, C, 1), lambda n, h: (n, 0, 0, 0)),
        ],
        out_specs=pl.BlockSpec((1, T, C, hw_t), lambda n, h: (n, 0, 0, h)),
        compiler_params=cparams_fuse,
    )(x_k, wconv, bconv, attn[..., None])

    # (N, T, C, HW) -> (N*T, C, H, W)  == fea_v.transpose(1,2).reshape(...)
    return fused.reshape(N * T, C, H, W)


# --------------------------------------------------------------------------- #
# Pure-JAX reference (mirrors the PyTorch forward)
# --------------------------------------------------------------------------- #
def reference(x, params, *, branchs, gamma=1.0):
    N, C, T, H, W = x.shape
    wconv, bconv = params["wconv"], params["bconv"]
    fea = x
    pro = []
    for i in range(branchs):
        xp = jnp.pad(fea, ((0, 0), (0, 0), (1, 1), (0, 0), (0, 0)))
        y = sum(wconv[i, k][None, :, None, None, None] * xp[:, :, k:k + T]
                for k in range(3))
        y = y + bconv[i][None, :, None, None, None]
        fea = jnp.maximum(y, 0.0)
        pro.append(fea)
    pro_feas = jnp.stack(pro, axis=1)                      # (N, br, C, T, H, W)
    fea_u = jnp.sum(pro_feas, axis=1) / branchs
    fea_s = jnp.mean(fea_u, axis=(2, 3, 4))                # (N, C)
    h = fea_s @ params["w1"] + params["b1"]
    h = h * params["bn_scale"] + params["bn_bias"]
    h = jnp.maximum(h, 0.0)
    vs = jnp.stack([h @ params["w2"][i] + params["b2"][i]
                    for i in range(branchs)], axis=1)      # (N, br, C)
    attn = jax.nn.softmax(vs * gamma, axis=1)
    fea_v = jnp.sum(pro_feas * attn[:, :, :, None, None, None], axis=1)
    fea_v = jnp.transpose(fea_v, (0, 2, 1, 3, 4))          # (N, T, C, H, W)
    return fea_v.reshape(N * T, C, H, W)


if __name__ == "__main__":
    key = jax.random.PRNGKey(0)
    N, C, T, H, W = 2, 16, 4, 16, 16
    branchs, rate, L, gamma = 3, 2, 32, 1.0
    d = max(C // rate, L)                                   # d = 32

    ks = jax.random.split(key, 10)
    x = jax.random.normal(ks[0], (N, C, T, H, W), jnp.float32)

    params = dict(
        wconv=0.5 * jax.random.normal(ks[1], (branchs, 3, C), jnp.float32),
        bconv=0.1 * jax.random.normal(ks[2], (branchs, C), jnp.float32),
        w1=0.2 * jax.random.normal(ks[3], (C, d), jnp.float32),
        b1=0.1 * jax.random.normal(ks[4], (d,), jnp.float32),
        w2=0.2 * jax.random.normal(ks[5], (branchs, d, C), jnp.float32),
        b2=0.1 * jax.random.normal(ks[6], (branchs, C), jnp.float32),
    )
    # BatchNorm1d (eval mode): fold weight/bias/running stats into scale+bias.
    bn_weight = 1.0 + 0.1 * jax.random.normal(ks[7], (d,), jnp.float32)
    bn_beta = 0.1 * jax.random.normal(ks[8], (d,), jnp.float32)
    bn_mean = jnp.zeros((d,), jnp.float32)
    bn_var = jnp.ones((d,), jnp.float32)
    eps = 1e-5
    scale = bn_weight / jnp.sqrt(bn_var + eps)
    params["bn_scale"] = scale
    params["bn_bias"] = bn_beta - bn_mean * scale

    # hw_tile=128 exercises the multi-tile pooled-accumulator path (HW=256).
    fn = jax.jit(lambda xx, pp: competitive_progressive_temporal_module(
        xx, pp, branchs=branchs, gamma=gamma, hw_tile=128))
    out = jax.block_until_ready(fn(x, params))

    ref = reference(x, params, branchs=branchs, gamma=gamma)
    np.testing.assert_allclose(np.asarray(out), np.asarray(ref),
                               rtol=2e-3, atol=2e-3)
    assert out.shape == (N * T, C, H, W)
    print("KERNEL_OK")
</pallas_src>

<mosaic_0001>
module attributes {stable_mosaic.version = 11 : i64} {
  func.func @pool_kernel(%arg0: i32, %arg1: i32, %arg2: memref<1x4x16x128xf32, #tpu.memory_space<vmem>>, %arg3: memref<3x3x16x1xf32, #tpu.memory_space<vmem>>, %arg4: memref<3x16x1xf32, #tpu.memory_space<vmem>>, %arg5: memref<1x16x1xf32, #tpu.memory_space<vmem>>) attributes {dimension_semantics = [#tpu.dimension_semantics<parallel>, #tpu.dimension_semantics<arbitrary>], iteration_bounds = array<i64: 2, 2>, scalar_prefetch = 0 : i64, scratch_operands = 0 : i64, tpu.core_type = #tpu.core_type<tc>, window_params = [{transform_indices = @transform_0, window_bounds = array<i64: 1, 4, 16, 128>}, {pipeline_mode = #tpu.pipeline_mode<synchronous>, transform_indices = @transform_1, window_bounds = array<i64: 3, 3, 16, 1>}, {pipeline_mode = #tpu.pipeline_mode<synchronous>, transform_indices = @transform_2, window_bounds = array<i64: 3, 16, 1>}, {transform_indices = @transform_3, window_bounds = array<i64: 1, 16, 1>}]} {
    %c0_i32 = arith.constant 0 : i32
    %0 = arith.cmpi eq, %arg1, %c0_i32 : i32
    %1 = arith.extui %0 : i1 to i32
    %c0_i32_0 = arith.constant 0 : i32
    %2 = arith.cmpi ne, %1, %c0_i32_0 : i32
    scf.if %2 {
      %cst_78 = arith.constant 0.000000e+00 : f32
      %185 = vector.broadcast %cst_78 : f32 to vector<1x16x1xf32>
      %c0_79 = arith.constant 0 : index
      %c0_80 = arith.constant 0 : index
      %c0_81 = arith.constant 0 : index
      %186 = vector.load %arg5[%c0_79, %c0_80, %c0_81] : memref<1x16x1xf32, #tpu.memory_space<vmem>>, vector<1x16x1xf32>
      tpu.vector_store %arg5[%c0_79, %c0_80, %c0_81], %185 {strides = array<i32>} : memref<1x16x1xf32, #tpu.memory_space<vmem>>, vector<1x16x1xf32>,
    } else {
    }
    %c0 = arith.constant 0 : index
    %c0_1 = arith.constant 0 : index
    %c0_2 = arith.constant 0 : index
    %c0_3 = arith.constant 0 : index
    %3 = vector.load %arg2[%c0, %c0_1, %c0_2, %c0_3] : memref<1x4x16x128xf32, #tpu.memory_space<vmem>>, vector<1x1x16x128xf32>
    %4 = vector.shape_cast %3 : vector<1x1x16x128xf32> to vector<16x128xf32>
    %c0_4 = arith.constant 0 : index
    %c1 = arith.constant 1 : index
    %c0_5 = arith.constant 0 : index
    %c0_6 = arith.constant 0 : index
    %5 = vector.load %arg2[%c0_4, %c1, %c0_5, %c0_6] : memref<1x4x16x128xf32, #tpu.memory_space<vmem>>, vector<1x1x16x128xf32>
    %6 = vector.shape_cast %5 : vector<1x1x16x128xf32> to vector<16x128xf32>
    %c0_7 = arith.constant 0 : index
    %c2 = arith.constant 2 : index
    %c0_8 = arith.constant 0 : index
    %c0_9 = arith.constant 0 : index
    %7 = vector.load %arg2[%c0_7, %c2, %c0_8, %c0_9] : memref<1x4x16x128xf32, #tpu.memory_space<vmem>>, vector<1x1x16x128xf32>
    %8 = vector.shape_cast %7 : vector<1x1x16x128xf32> to vector<16x128xf32>
    %c0_10 = arith.constant 0 : index
    %c3 = arith.constant 3 : index
    %c0_11 = arith.constant 0 : index
    %c0_12 = arith.constant 0 : index
    %9 = vector.load %arg2[%c0_10, %c3, %c0_11, %c0_12] : memref<1x4x16x128xf32, #tpu.memory_space<vmem>>, vector<1x1x16x128xf32>
    %10 = vector.shape_cast %9 : vector<1x1x16x128xf32> to vector<16x128xf32>
    %cst = arith.constant 0.000000e+00 : f32
    %11 = vector.broadcast %cst : f32 to vector<16x128xf32>
    %c0_13 = arith.constant 0 : index
    %c0_14 = arith.constant 0 : index
    %c0_15 = arith.constant 0 : index
    %c0_16 = arith.constant 0 : index
    %12 = vector.load %arg3[%c0_13, %c0_14, %c0_15, %c0_16] : memref<3x3x16x1xf32, #tpu.memory_space<vmem>>, vector<1x1x16x1xf32>
    %13 = vector.shape_cast %12 : vector<1x1x16x1xf32> to vector<16x1xf32>
    %c0_17 = arith.constant 0 : index
    %c1_18 = arith.constant 1 : index
    %c0_19 = arith.constant 0 : index
    %c0_20 = arith.constant 0 : index
    %14 = vector.load %arg3[%c0_17, %c1_18, %c0_19, %c0_20] : memref<3x3x16x1xf32, #tpu.memory_space<vmem>>, vector<1x1x16x1xf32>
    %15 = vector.shape_cast %14 : vector<1x1x16x1xf32> to vector<16x1xf32>
    %c0_21 = arith.constant 0 : index
    %c2_22 = arith.constant 2 : index
    %c0_23 = arith.constant 0 : index
    %c0_24 = arith.constant 0 : index
    %16 = vector.load %arg3[%c0_21, %c2_22, %c0_23, %c0_24] : memref<3x3x16x1xf32, #tpu.memory_space<vmem>>, vector<1x1x16x1xf32>
    %17 = vector.shape_cast %16 : vector<1x1x16x1xf32> to vector<16x1xf32>
    %c0_25 = arith.constant 0 : index
    %c0_26 = arith.constant 0 : index
    %c0_27 = arith.constant 0 : index
    %18 = vector.load %arg4[%c0_25, %c0_26, %c0_27] : memref<3x16x1xf32, #tpu.memory_space<vmem>>, vector<1x16x1xf32>
    %19 = vector.shape_cast %18 : vector<1x16x1xf32> to vector<16x1xf32>
    %20 = vector.broadcast %15 : vector<16x1xf32> to vector<16x128xf32>
    %21 = arith.mulf %20, %4 : vector<16x128xf32>
    %22 = vector.broadcast %19 : vector<16x1xf32> to vector<16x128xf32>
    %23 = arith.addf %21, %22 : vector<16x128xf32>
    %24 = vector.broadcast %17 : vector<16x1xf32> to vector<16x128xf32>
    %25 = arith.mulf %24, %6 : vector<16x128xf32>
    %26 = arith.addf %23, %25 : vector<16x128xf32>
    %cst_28 = arith.constant 0.000000e+00 : f32
    %27 = vector.broadcast %cst_28 : f32 to vector<16x128xf32>
    %28 = arith.maximumf %26, %27 : vector<16x128xf32>
    %29 = arith.addf %11, %28 : vector<16x128xf32>
    %30 = vector.broadcast %15 : vector<16x1xf32> to vector<16x128xf32>
    %31 = arith.mulf %30, %6 : vector<16x128xf32>
    %32 = vector.broadcast %19 : vector<16x1xf32> to vector<16x128xf32>
    %33 = arith.addf %31, %32 : vector<16x128xf32>
    %34 = vector.broadcast %13 : vector<16x1xf32> to vector<16x128xf32>
    %35 = arith.mulf %34, %4 : vector<16x128xf32>
    %36 = arith.addf %33, %35 : vector<16x128xf32>
    %37 = vector.broadcast %17 : vector<16x1xf32> to vector<16x128xf32>
    %38 = arith.mulf %37, %8 : vector<16x128xf32>
    %39 = arith.addf %36, %38 : vector<16x128xf32>
    %cst_29 = arith.constant 0.000000e+00 : f32
    %40 = vector.broadcast %cst_29 : f32 to vector<16x128xf32>
    %41 = arith.maximumf %39, %40 : vector<16x128xf32>
    %42 = arith.addf %29, %41 : vector<16x128xf32>
    %43 = vector.broadcast %15 : vector<16x1xf32> to vector<16x128xf32>
    %44 = arith.mulf %43, %8 : vector<16x128xf32>
    %45 = vector.broadcast %19 : vector<16x1xf32> to vector<16x128xf32>
    %46 = arith.addf %44, %45 : vector<16x128xf32>
    %47 = vector.broadcast %13 : vector<16x1xf32> to vector<16x128xf32>
    %48 = arith.mulf %47, %6 : vector<16x128xf32>
    %49 = arith.addf %46, %48 : vector<16x128xf32>
    %50 = vector.broadcast %17 : vector<16x1xf32> to vector<16x128xf32>
    %51 = arith.mulf %50, %10 : vector<16x128xf32>
    %52 = arith.addf %49, %51 : vector<16x128xf32>
    %cst_30 = arith.constant 0.000000e+00 : f32
    %53 = vector.broadcast %cst_30 : f32 to vector<16x128xf32>
    %54 = arith.maximumf %52, %53 : vector<16x128xf32>
    %55 = arith.addf %42, %54 : vector<16x128xf32>
    %56 = vector.broadcast %15 : vector<16x1xf32> to vector<16x128xf32>
    %57 = arith.mulf %56, %10 : vector<16x128xf32>
    %58 = vector.broadcast %19 : vector<16x1xf32> to vector<16x128xf32>
    %59 = arith.addf %57, %58 : vector<16x128xf32>
    %60 = vector.broadcast %13 : vector<16x1xf32> to vector<16x128xf32>
    %61 = arith.mulf %60, %8 : vector<16x128xf32>
    %62 = arith.addf %59, %61 : vector<16x128xf32>
    %cst_31 = arith.constant 0.000000e+00 : f32
    %63 = vector.broadcast %cst_31 : f32 to vector<16x128xf32>
    %64 = arith.maximumf %62, %63 : vector<16x128xf32>
    %65 = arith.addf %55, %64 : vector<16x128xf32>
    %c1_32 = arith.constant 1 : index
    %c0_33 = arith.constant 0 : index
    %c0_34 = arith.constant 0 : index
    %c0_35 = arith.constant 0 : index
    %66 = vector.load %arg3[%c1_32, %c0_33, %c0_34, %c0_35] : memref<3x3x16x1xf32, #tpu.memory_space<vmem>>, vector<1x1x16x1xf32>
    %67 = vector.shape_cast %66 : vector<1x1x16x1xf32> to vector<16x1xf32>
    %c1_36 = arith.constant 1 : index
    %c1_37 = arith.constant 1 : index
    %c0_38 = arith.constant 0 : index
    %c0_39 = arith.constant 0 : index
    %68 = vector.load %arg3[%c1_36, %c1_37, %c0_38, %c0_39] : memref<3x3x16x1xf32, #tpu.memory_space<vmem>>, vector<1x1x16x1xf32>
    %69 = vector.shape_cast %68 : vector<1x1x16x1xf32> to vector<16x1xf32>
    %c1_40 = arith.constant 1 : index
    %c2_41 = arith.constant 2 : index
    %c0_42 = arith.constant 0 : index
    %c0_43 = arith.constant 0 : index
    %70 = vector.load %arg3[%c1_40, %c2_41, %c0_42, %c0_43] : memref<3x3x16x1xf32, #tpu.memory_space<vmem>>, vector<1x1x16x1xf32>
    %71 = vector.shape_cast %70 : vector<1x1x16x1xf32> to vector<16x1xf32>
    %c1_44 = arith.constant 1 : index
    %c0_45 = arith.constant 0 : index
    %c0_46 = arith.constant 0 : index
    %72 = vector.load %arg4[%c1_44, %c0_45, %c0_46] : memref<3x16x1xf32, #tpu.memory_space<vmem>>, vector<1x16x1xf32>
    %73 = vector.shape_cast %72 : vector<1x16x1xf32> to vector<16x1xf32>
    %74 = vector.broadcast %69 : vector<16x1xf32> to vector<16x128xf32>
    %75 = arith.mulf %74, %28 : vector<16x128xf32>
    %76 = vector.broadcast %73 : vector<16x1xf32> to vector<16x128xf32>
    %77 = arith.addf %75, %76 : vector<16x128xf32>
    %78 = vector.broadcast %71 : vector<16x1xf32> to vector<16x128xf32>
    %79 = arith.mulf %78, %41 : vector<16x128xf32>
    %80 = arith.addf %77, %79 : vector<16x128xf32>
    %cst_47 = arith.constant 0.000000e+00 : f32
    %81 = vector.broadcast %cst_47 : f32 to vector<16x128xf32>
    %82 = arith.maximumf %80, %81 : vector<16x128xf32>
    %83 = arith.addf %65, %82 : vector<16x128xf32>
    %84 = vector.broadcast %69 : vector<16x1xf32> to vector<16x128xf32>
    %85 = arith.mulf %84, %41 : vector<16x128xf32>
    %86 = vector.broadcast %73 : vector<16x1xf32> to vector<16x128xf32>
    %87 = arith.addf %85, %86 : vector<16x128xf32>
    %88 = vector.broadcast %67 : vector<16x1xf32> to vector<16x128xf32>
    %89 = arith.mulf %88, %28 : vector<16x128xf32>
    %90 = arith.addf %87, %89 : vector<16x128xf32>
    %91 = vector.broadcast %71 : vector<16x1xf32> to vector<16x128xf32>
    %92 = arith.mulf %91, %54 : vector<16x128xf32>
    %93 = arith.addf %90, %92 : vector<16x128xf32>
    %cst_48 = arith.constant 0.000000e+00 : f32
    %94 = vector.broadcast %cst_48 : f32 to vector<16x128xf32>
    %95 = arith.maximumf %93, %94 : vector<16x128xf32>
    %96 = arith.addf %83, %95 : vector<16x128xf32>
    %97 = vector.broadcast %69 : vector<16x1xf32> to vector<16x128xf32>
    %98 = arith.mulf %97, %54 : vector<16x128xf32>
    %99 = vector.broadcast %73 : vector<16x1xf32> to vector<16x128xf32>
    %100 = arith.addf %98, %99 : vector<16x128xf32>
    %101 = vector.broadcast %67 : vector<16x1xf32> to vector<16x128xf32>
    %102 = arith.mulf %101, %41 : vector<16x128xf32>
    %103 = arith.addf %100, %102 : vector<16x128xf32>
    %104 = vector.broadcast %71 : vector<16x1xf32> to vector<16x128xf32>
    %105 = arith.mulf %104, %64 : vector<16x128xf32>
    %106 = arith.addf %103, %105 : vector<16x128xf32>
    %cst_49 = arith.constant 0.000000e+00 : f32
    %107 = vector.broadcast %cst_49 : f32 to vector<16x128xf32>
    %108 = arith.maximumf %106, %107 : vector<16x128xf32>
    %109 = arith.addf %96, %108 : vector<16x128xf32>
    %110 = vector.broadcast %69 : vector<16x1xf32> to vector<16x128xf32>
    %111 = arith.mulf %110, %64 : vector<16x128xf32>
    %112 = vector.broadcast %73 : vector<16x1xf32> to vector<16x128xf32>
    %113 = arith.addf %111, %112 : vector<16x128xf32>
    %114 = vector.broadcast %67 : vector<16x1xf32> to vector<16x128xf32>
    %115 = arith.mulf %114, %54 : vector<16x128xf32>
    %116 = arith.addf %113, %115 : vector<16x128xf32>
    %cst_50 = arith.constant 0.000000e+00 : f32
    %117 = vector.broadcast %cst_50 : f32 to vector<16x128xf32>
    %118 = arith.maximumf %116, %117 : vector<16x128xf32>
    %119 = arith.addf %109, %118 : vector<16x128xf32>
    %c2_51 = arith.constant 2 : index
    %c0_52 = arith.constant 0 : index
    %c0_53 = arith.constant 0 : index
    %c0_54 = arith.constant 0 : index
    %120 = vector.load %arg3[%c2_51, %c0_52, %c0_53, %c0_54] : memref<3x3x16x1xf32, #tpu.memory_space<vmem>>, vector<1x1x16x1xf32>
    %121 = vector.shape_cast %120 : vector<1x1x16x1xf32> to vector<16x1xf32>
    %c2_55 = arith.constant 2 : index
    %c1_56 = arith.constant 1 : index
    %c0_57 = arith.constant 0 : index
    %c0_58 = arith.constant 0 : index
    %122 = vector.load %arg3[%c2_55, %c1_56, %c0_57, %c0_58] : memref<3x3x16x1xf32, #tpu.memory_space<vmem>>, vector<1x1x16x1xf32>
    %123 = vector.shape_cast %122 : vector<1x1x16x1xf32> to vector<16x1xf32>
    %c2_59 = arith.constant 2 : index
    %c2_60 = arith.constant 2 : index
    %c0_61 = arith.constant 0 : index
    %c0_62 = arith.constant 0 : index
    %124 = vector.load %arg3[%c2_59, %c2_60, %c0_61, %c0_62] : memref<3x3x16x1xf32, #tpu.memory_space<vmem>>, vector<1x1x16x1xf32>
    %125 = vector.shape_cast %124 : vector<1x1x16x1xf32> to vector<16x1xf32>
    %c2_63 = arith.constant 2 : index
    %c0_64 = arith.constant 0 : index
    %c0_65 = arith.constant 0 : index
    %126 = vector.load %arg4[%c2_63, %c0_64, %c0_65] : memref<3x16x1xf32, #tpu.memory_space<vmem>>, vector<1x16x1xf32>
    %127 = vector.shape_cast %126 : vector<1x16x1xf32> to vector<16x1xf32>
    %128 = vector.broadcast %123 : vector<16x1xf32> to vector<16x128xf32>
    %129 = arith.mulf %128, %82 : vector<16x128xf32>
    %130 = vector.broadcast %127 : vector<16x1xf32> to vector<16x128xf32>
    %131 = arith.addf %129, %130 : vector<16x128xf32>
    %132 = vector.broadcast %125 : vector<16x1xf32> to vector<16x128xf32>
    %133 = arith.mulf %132, %95 : vector<16x128xf32>
    %134 = arith.addf %131, %133 : vector<16x128xf32>
    %cst_66 = arith.constant 0.000000e+00 : f32
    %135 = vector.broadcast %cst_66 : f32 to vector<16x128xf32>
    %136 = arith.maximumf %134, %135 : vector<16x128xf32>
    %137 = arith.addf %119, %136 : vector<16x128xf32>
    %138 = vector.broadcast %123 : vector<16x1xf32> to vector<16x128xf32>
    %139 = arith.mulf %138, %95 : vector<16x128xf32>
    %140 = vector.broadcast %127 : vector<16x1xf32> to vector<16x128xf32>
    %141 = arith.addf %139, %140 : vector<16x128xf32>
    %142 = vector.broadcast %121 : vector<16x1xf32> to vector<16x128xf32>
    %143 = arith.mulf %142, %82 : vector<16x128xf32>
    %144 = arith.addf %141, %143 : vector<16x128xf32>
    %145 = vector.broadcast %125 : vector<16x1xf32> to vector<16x128xf32>
    %146 = arith.mulf %145, %108 : vector<16x128xf32>
    %147 = arith.addf %144, %146 : vector<16x128xf32>
    %cst_67 = arith.constant 0.000000e+00 : f32
    %148 = vector.broadcast %cst_67 : f32 to vector<16x128xf32>
    %149 = arith.maximumf %147, %148 : vector<16x128xf32>
    %150 = arith.addf %137, %149 : vector<16x128xf32>
    %151 = vector.broadcast %123 : vector<16x1xf32> to vector<16x128xf32>
    %152 = arith.mulf %151, %108 : vector<16x128xf32>
    %153 = vector.broadcast %127 : vector<16x1xf32> to vector<16x128xf32>
    %154 = arith.addf %152, %153 : vector<16x128xf32>
    %155 = vector.broadcast %121 : vector<16x1xf32> to vector<16x128xf32>
    %156 = arith.mulf %155, %95 : vector<16x128xf32>
    %157 = arith.addf %154, %156 : vector<16x128xf32>
    %158 = vector.broadcast %125 : vector<16x1xf32> to vector<16x128xf32>
    %159 = arith.mulf %158, %118 : vector<16x128xf32>
    %160 = arith.addf %157, %159 : vector<16x128xf32>
    %cst_68 = arith.constant 0.000000e+00 : f32
    %161 = vector.broadcast %cst_68 : f32 to vector<16x128xf32>
    %162 = arith.maximumf %160, %161 : vector<16x128xf32>
    %163 = arith.addf %150, %162 : vector<16x128xf32>
    %164 = vector.broadcast %123 : vector<16x1xf32> to vector<16x128xf32>
    %165 = arith.mulf %164, %118 : vector<16x128xf32>
    %166 = vector.broadcast %127 : vector<16x1xf32> to vector<16x128xf32>
    %167 = arith.addf %165, %166 : vector<16x128xf32>
    %168 = vector.broadcast %121 : vector<16x1xf32> to vector<16x128xf32>
    %169 = arith.mulf %168, %108 : vector<16x128xf32>
    %170 = arith.addf %167, %169 : vector<16x128xf32>
    %cst_69 = arith.constant 0.000000e+00 : f32
    %171 = vector.broadcast %cst_69 : f32 to vector<16x128xf32>
    %172 = arith.maximumf %170, %171 : vector<16x128xf32>
    %173 = arith.addf %163, %172 : vector<16x128xf32>
    %c0_70 = arith.constant 0 : index
    %c0_71 = arith.constant 0 : index
    %c0_72 = arith.constant 0 : index
    %174 = vector.load %arg5[%c0_70, %c0_71, %c0_72] : memref<1x16x1xf32, #tpu.memory_space<vmem>>, vector<1x16x1xf32>
    %175 = vector.shape_cast %174 : vector<1x16x1xf32> to vector<16x1xf32>
    %cst_73 = arith.constant dense<0.000000e+00> : vector<16xf32>
    %176 = vector.multi_reduction <add>, %173, %cst_73 [1] : vector<16x128xf32> to vector<16xf32>
    %177 = vector.shape_cast %176 : vector<16xf32> to vector<16x1xf32>
    %178 = arith.addf %175, %177 : vector<16x1xf32>
    %c0_74 = arith.constant 0 : index
    %c0_75 = arith.constant 0 : index
    %c0_76 = arith.constant 0 : index
    %179 = vector.load %arg5[%c0_74, %c0_75, %c0_76] : memref<1x16x1xf32, #tpu.memory_space<vmem>>, vector<1x16x1xf32>
    %180 = vector.shape_cast %179 : vector<1x16x1xf32> to vector<16x1xf32>
    %181 = vector.shape_cast %178 : vector<16x1xf32> to vector<1x16x1xf32>
    tpu.vector_store %arg5[%c0_74, %c0_75, %c0_76], %181 {strides = array<i32>} : memref<1x16x1xf32, #tpu.memory_space<vmem>>, vector<1x16x1xf32>,
    %c1_i32 = arith.constant 1 : i32
    %182 = arith.cmpi eq, %arg1, %c1_i32 : i32
    %183 = arith.extui %182 : i1 to i32
    %c0_i32_77 = arith.constant 0 : i32
    %184 = arith.cmpi ne, %183, %c0_i32_77 : i32
    scf.if %184 {
      %c0_78 = arith.constant 0 : index
      %c0_79 = arith.constant 0 : index
      %c0_80 = arith.constant 0 : index
      %185 = vector.load %arg5[%c0_78, %c0_79, %c0_80] : memref<1x16x1xf32, #tpu.memory_space<vmem>>, vector<1x16x1xf32>
      %cst_81 = arith.constant 3.25520843E-4 : f32
      %186 = vector.broadcast %cst_81 : f32 to vector<1x16x1xf32>
      %187 = arith.mulf %185, %186 : vector<1x16x1xf32>
      %c0_82 = arith.constant 0 : index
      %c0_83 = arith.constant 0 : index
      %c0_84 = arith.constant 0 : index
      %188 = vector.load %arg5[%c0_82, %c0_83, %c0_84] : memref<1x16x1xf32, #tpu.memory_space<vmem>>, vector<1x16x1xf32>
      tpu.vector_store %arg5[%c0_82, %c0_83, %c0_84], %187 {strides = array<i32>} : memref<1x16x1xf32, #tpu.memory_space<vmem>>, vector<1x16x1xf32>,
    } else {
    }
    return
  }
  func.func @transform_0(%arg0: i32, %arg1: i32) -> (i32, i32, i32, i32) {
    %c0_i32 = arith.constant 0 : i32
    %c0_i32_0 = arith.constant 0 : i32
    %c0_i32_1 = arith.constant 0 : i32
    return %arg0, %c0_i32, %c0_i32_0, %arg1 : i32, i32, i32, i32
  }
  func.func @transform_1(%arg0: i32, %arg1: i32) -> (i32, i32, i32, i32) {
    %c0_i32 = arith.constant 0 : i32
    %c0_i32_0 = arith.constant 0 : i32
    %c0_i32_1 = arith.constant 0 : i32
    %c0_i32_2 = arith.constant 0 : i32
    %c0_i32_3 = arith.constant 0 : i32
    return %c0_i32, %c0_i32_0, %c0_i32_1, %c0_i32_2 : i32, i32, i32, i32
  }
  func.func @transform_2(%arg0: i32, %arg1: i32) -> (i32, i32, i32) {
    %c0_i32 = arith.constant 0 : i32
    %c0_i32_0 = arith.constant 0 : i32
    %c0_i32_1 = arith.constant 0 : i32
    %c0_i32_2 = arith.constant 0 : i32
    return %c0_i32, %c0_i32_0, %c0_i32_1 : i32, i32, i32
  }
  func.func @transform_3(%arg0: i32, %arg1: i32) -> (i32, i32, i32) {
    %c0_i32 = arith.constant 0 : i32
    %c0_i32_0 = arith.constant 0 : i32
    %c0_i32_1 = arith.constant 0 : i32
    return %arg0, %c0_i32, %c0_i32_0 : i32, i32, i32
  }
}

module attributes {stable_mosaic.version = 11 : i64} {
  func.func @fuse_kernel(%arg0: i32, %arg1: i32, %arg2: memref<1x4x16x128xf32, #tpu.memory_space<vmem>>, %arg3: memref<3x3x16x1xf32, #tpu.memory_space<vmem>>, %arg4: memref<3x16x1xf32, #tpu.memory_space<vmem>>, %arg5: memref<1x3x16x1xf32, #tpu.memory_space<vmem>>, %arg6: memref<1x4x16x128xf32, #tpu.memory_space<vmem>>) attributes {dimension_semantics = [#tpu.dimension_semantics<parallel>, #tpu.dimension_semantics<parallel>], iteration_bounds = array<i64: 2, 2>, scalar_prefetch = 0 : i64, scratch_operands = 0 : i64, tpu.core_type = #tpu.core_type<tc>, window_params = [{transform_indices = @transform_0, window_bounds = array<i64: 1, 4, 16, 128>}, {pipeline_mode = #tpu.pipeline_mode<synchronous>, transform_indices = @transform_1, window_bounds = array<i64: 3, 3, 16, 1>}, {pipeline_mode = #tpu.pipeline_mode<synchronous>, transform_indices = @transform_2, window_bounds = array<i64: 3, 16, 1>}, {transform_indices = @transform_3, window_bounds = array<i64: 1, 3, 16, 1>}, {transform_indices = @transform_4, window_bounds = array<i64: 1, 4, 16, 128>}]} {
    %c0 = arith.constant 0 : index
    %c0_0 = arith.constant 0 : index
    %c0_1 = arith.constant 0 : index
    %c0_2 = arith.constant 0 : index
    %0 = vector.load %arg2[%c0, %c0_0, %c0_1, %c0_2] : memref<1x4x16x128xf32, #tpu.memory_space<vmem>>, vector<1x1x16x128xf32>
    %1 = vector.shape_cast %0 : vector<1x1x16x128xf32> to vector<16x128xf32>
    %c0_3 = arith.constant 0 : index
    %c1 = arith.constant 1 : index
    %c0_4 = arith.constant 0 : index
    %c0_5 = arith.constant 0 : index
    %2 = vector.load %arg2[%c0_3, %c1, %c0_4, %c0_5] : memref<1x4x16x128xf32, #tpu.memory_space<vmem>>, vector<1x1x16x128xf32>
    %3 = vector.shape_cast %2 : vector<1x1x16x128xf32> to vector<16x128xf32>
    %c0_6 = arith.constant 0 : index
    %c2 = arith.constant 2 : index
    %c0_7 = arith.constant 0 : index
    %c0_8 = arith.constant 0 : index
    %4 = vector.load %arg2[%c0_6, %c2, %c0_7, %c0_8] : memref<1x4x16x128xf32, #tpu.memory_space<vmem>>, vector<1x1x16x128xf32>
    %5 = vector.shape_cast %4 : vector<1x1x16x128xf32> to vector<16x128xf32>
    %c0_9 = arith.constant 0 : index
    %c3 = arith.constant 3 : index
    %c0_10 = arith.constant 0 : index
    %c0_11 = arith.constant 0 : index
    %6 = vector.load %arg2[%c0_9, %c3, %c0_10, %c0_11] : memref<1x4x16x128xf32, #tpu.memory_space<vmem>>, vector<1x1x16x128xf32>
    %7 = vector.shape_cast %6 : vector<1x1x16x128xf32> to vector<16x128xf32>
    %c0_12 = arith.constant 0 : index
    %c0_13 = arith.constant 0 : index
    %c0_14 = arith.constant 0 : index
    %c0_15 = arith.constant 0 : index
    %8 = vector.load %arg3[%c0_12, %c0_13, %c0_14, %c0_15] : memref<3x3x16x1xf32, #tpu.memory_space<vmem>>, vector<1x1x16x1xf32>
    %9 = vector.shape_cast %8 : vector<1x1x16x1xf32> to vector<16x1xf32>
    %c0_16 = arith.constant 0 : index
    %c1_17 = arith.constant 1 : index
    %c0_18 = arith.constant 0 : index
    %c0_19 = arith.constant 0 : index
    %10 = vector.load %arg3[%c0_16, %c1_17, %c0_18, %c0_19] : memref<3x3x16x1xf32, #tpu.memory_space<vmem>>, vector<1x1x16x1xf32>
    %11 = vector.shape_cast %10 : vector<1x1x16x1xf32> to vector<16x1xf32>
    %c0_20 = arith.constant 0 : index
    %c2_21 = arith.constant 2 : index
    %c0_22 = arith.constant 0 : index
    %c0_23 = arith.constant 0 : index
    %12 = vector.load %arg3[%c0_20, %c2_21, %c0_22, %c0_23] : memref<3x3x16x1xf32, #tpu.memory_space<vmem>>, vector<1x1x16x1xf32>
    %13 = vector.shape_cast %12 : vector<1x1x16x1xf32> to vector<16x1xf32>
    %c0_24 = arith.constant 0 : index
    %c0_25 = arith.constant 0 : index
    %c0_26 = arith.constant 0 : index
    %14 = vector.load %arg4[%c0_24, %c0_25, %c0_26] : memref<3x16x1xf32, #tpu.memory_space<vmem>>, vector<1x16x1xf32>
    %15 = vector.shape_cast %14 : vector<1x16x1xf32> to vector<16x1xf32>
    %c0_27 = arith.constant 0 : index
    %c0_28 = arith.constant 0 : index
    %c0_29 = arith.constant 0 : index
    %c0_30 = arith.constant 0 : index
    %16 = vector.load %arg5[%c0_27, %c0_28, %c0_29, %c0_30] : memref<1x3x16x1xf32, #tpu.memory_space<vmem>>, vector<1x1x16x1xf32>
    %17 = vector.shape_cast %16 : vector<1x1x16x1xf32> to vector<16x1xf32>
    %18 = vector.broadcast %11 : vector<16x1xf32> to vector<16x128xf32>
    %19 = arith.mulf %18, %1 : vector<16x128xf32>
    %20 = vector.broadcast %15 : vector<16x1xf32> to vector<16x128xf32>
    %21 = arith.addf %19, %20 : vector<16x128xf32>
    %22 = vector.broadcast %13 : vector<16x1xf32> to vector<16x128xf32>
    %23 = arith.mulf %22, %3 : vector<16x128xf32>
    %24 = arith.addf %21, %23 : vector<16x128xf32>
    %cst = arith.constant 0.000000e+00 : f32
    %25 = vector.broadcast %cst : f32 to vector<16x128xf32>
    %26 = arith.maximumf %24, %25 : vector<16x128xf32>
    %27 = vector.broadcast %17 : vector<16x1xf32> to vector<16x128xf32>
    %28 = arith.mulf %27, %26 : vector<16x128xf32>
    %29 = vector.broadcast %11 : vector<16x1xf32> to vector<16x128xf32>
    %30 = arith.mulf %29, %3 : vector<16x128xf32>
    %31 = vector.broadcast %15 : vector<16x1xf32> to vector<16x128xf32>
    %32 = arith.addf %30, %31 : vector<16x128xf32>
    %33 = vector.broadcast %9 : vector<16x1xf32> to vector<16x128xf32>
    %34 = arith.mulf %33, %1 : vector<16x128xf32>
    %35 = arith.addf %32, %34 : vector<16x128xf32>
    %36 = vector.broadcast %13 : vector<16x1xf32> to vector<16x128xf32>
    %37 = arith.mulf %36, %5 : vector<16x128xf32>
    %38 = arith.addf %35, %37 : vector<16x128xf32>
    %cst_31 = arith.constant 0.000000e+00 : f32
    %39 = vector.broadcast %cst_31 : f32 to vector<16x128xf32>
    %40 = arith.maximumf %38, %39 : vector<16x128xf32>
    %41 = vector.broadcast %17 : vector<16x1xf32> to vector<16x128xf32>
    %42 = arith.mulf %41, %40 : vector<16x128xf32>
    %43 = vector.broadcast %11 : vector<16x1xf32> to vector<16x128xf32>
    %44 = arith.mulf %43, %5 : vector<16x128xf32>
    %45 = vector.broadcast %15 : vector<16x1xf32> to vector<16x128xf32>
    %46 = arith.addf %44, %45 : vector<16x128xf32>
    %47 = vector.broadcast %9 : vector<16x1xf32> to vector<16x128xf32>
    %48 = arith.mulf %47, %3 : vector<16x128xf32>
    %49 = arith.addf %46, %48 : vector<16x128xf32>
    %50 = vector.broadcast %13 : vector<16x1xf32> to vector<16x128xf32>
    %51 = arith.mulf %50, %7 : vector<16x128xf32>
    %52 = arith.addf %49, %51 : vector<16x128xf32>
    %cst_32 = arith.constant 0.000000e+00 : f32
    %53 = vector.broadcast %cst_32 : f32 to vector<16x128xf32>
    %54 = arith.maximumf %52, %53 : vector<16x128xf32>
    %55 = vector.broadcast %17 : vector<16x1xf32> to vector<16x128xf32>
    %56 = arith.mulf %55, %54 : vector<16x128xf32>
    %57 = vector.broadcast %11 : vector<16x1xf32> to vector<16x128xf32>
    %58 = arith.mulf %57, %7 : vector<16x128xf32>
    %59 = vector.broadcast %15 : vector<16x1xf32> to vector<16x128xf32>
    %60 = arith.addf %58, %59 : vector<16x128xf32>
    %61 = vector.broadcast %9 : vector<16x1xf32> to vector<16x128xf32>
    %62 = arith.mulf %61, %5 : vector<16x128xf32>
    %63 = arith.addf %60, %62 : vector<16x128xf32>
    %cst_33 = arith.constant 0.000000e+00 : f32
    %64 = vector.broadcast %cst_33 : f32 to vector<16x128xf32>
    %65 = arith.maximumf %63, %64 : vector<16x128xf32>
    %66 = vector.broadcast %17 : vector<16x1xf32> to vector<16x128xf32>
    %67 = arith.mulf %66, %65 : vector<16x128xf32>
    %c1_34 = arith.constant 1 : index
    %c0_35 = arith.constant 0 : index
    %c0_36 = arith.constant 0 : index
    %c0_37 = arith.constant 0 : index
    %68 = vector.load %arg3[%c1_34, %c0_35, %c0_36, %c0_37] : memref<3x3x16x1xf32, #tpu.memory_space<vmem>>, vector<1x1x16x1xf32>
    %69 = vector.shape_cast %68 : vector<1x1x16x1xf32> to vector<16x1xf32>
    %c1_38 = arith.constant 1 : index
    %c1_39 = arith.constant 1 : index
    %c0_40 = arith.constant 0 : index
    %c0_41 = arith.constant 0 : index
    %70 = vector.load %arg3[%c1_38, %c1_39, %c0_40, %c0_41] : memref<3x3x16x1xf32, #tpu.memory_space<vmem>>, vector<1x1x16x1xf32>
    %71 = vector.shape_cast %70 : vector<1x1x16x1xf32> to vector<16x1xf32>
    %c1_42 = arith.constant 1 : index
    %c2_43 = arith.constant 2 : index
    %c0_44 = arith.constant 0 : index
    %c0_45 = arith.constant 0 : index
    %72 = vector.load %arg3[%c1_42, %c2_43, %c0_44, %c0_45] : memref<3x3x16x1xf32, #tpu.memory_space<vmem>>, vector<1x1x16x1xf32>
    %73 = vector.shape_cast %72 : vector<1x1x16x1xf32> to vector<16x1xf32>
    %c1_46 = arith.constant 1 : index
    %c0_47 = arith.constant 0 : index
    %c0_48 = arith.constant 0 : index
    %74 = vector.load %arg4[%c1_46, %c0_47, %c0_48] : memref<3x16x1xf32, #tpu.memory_space<vmem>>, vector<1x16x1xf32>
    %75 = vector.shape_cast %74 : vector<1x16x1xf32> to vector<16x1xf32>
    %c0_49 = arith.constant 0 : index
    %c1_50 = arith.constant 1 : index
    %c0_51 = arith.constant 0 : index
    %c0_52 = arith.constant 0 : index
    %76 = vector.load %arg5[%c0_49, %c1_50, %c0_51, %c0_52] : memref<1x3x16x1xf32, #tpu.memory_space<vmem>>, vector<1x1x16x1xf32>
    %77 = vector.shape_cast %76 : vector<1x1x16x1xf32> to vector<16x1xf32>
    %78 = vector.broadcast %71 : vector<16x1xf32> to vector<16x128xf32>
    %79 = arith.mulf %78, %26 : vector<16x128xf32>
    %80 = vector.broadcast %75 : vector<16x1xf32> to vector<16x128xf32>
    %81 = arith.addf %79, %80 : vector<16x128xf32>
    %82 = vector.broadcast %73 : vector<16x1xf32> to vector<16x128xf32>
    %83 = arith.mulf %82, %40 : vector<16x128xf32>
    %84 = arith.addf %81, %83 : vector<16x128xf32>
    %cst_53 = arith.constant 0.000000e+00 : f32
    %85 = vector.broadcast %cst_53 : f32 to vector<16x128xf32>
    %86 = arith.maximumf %84, %85 : vector<16x128xf32>
    %87 = vector.broadcast %77 : vector<16x1xf32> to vector<16x128xf32>
    %88 = arith.mulf %87, %86 : vector<16x128xf32>
    %89 = arith.addf %28, %88 : vector<16x128xf32>
    %90 = vector.broadcast %71 : vector<16x1xf32> to vector<16x128xf32>
    %91 = arith.mulf %90, %40 : vector<16x128xf32>
    %92 = vector.broadcast %75 : vector<16x1xf32> to vector<16x128xf32>
    %93 = arith.addf %91, %92 : vector<16x128xf32>
    %94 = vector.broadcast %69 : vector<16x1xf32> to vector<16x128xf32>
    %95 = arith.mulf %94, %26 : vector<16x128xf32>
    %96 = arith.addf %93, %95 : vector<16x128xf32>
    %97 = vector.broadcast %73 : vector<16x1xf32> to vector<16x128xf32>
    %98 = arith.mulf %97, %54 : vector<16x128xf32>
    %99 = arith.addf %96, %98 : vector<16x128xf32>
    %cst_54 = arith.constant 0.000000e+00 : f32
    %100 = vector.broadcast %cst_54 : f32 to vector<16x128xf32>
    %101 = arith.maximumf %99, %100 : vector<16x128xf32>
    %102 = vector.broadcast %77 : vector<16x1xf32> to vector<16x128xf32>
    %103 = arith.mulf %102, %101 : vector<16x128xf32>
    %104 = arith.addf %42, %103 : vector<16x128xf32>
    %105 = vector.broadcast %71 : vector<16x1xf32> to vector<16x128xf32>
    %106 = arith.mulf %105, %54 : vector<16x128xf32>
    %107 = vector.broadcast %75 : vector<16x1xf32> to vector<16x128xf32>
    %108 = arith.addf %106, %107 : vector<16x128xf32>
    %109 = vector.broadcast %69 : vector<16x1xf32> to vector<16x128xf32>
    %110 = arith.mulf %109, %40 : vector<16x128xf32>
    %111 = arith.addf %108, %110 : vector<16x128xf32>
    %112 = vector.broadcast %73 : vector<16x1xf32> to vector<16x128xf32>
    %113 = arith.mulf %112, %65 : vector<16x128xf32>
    %114 = arith.addf %111, %113 : vector<16x128xf32>
    %cst_55 = arith.constant 0.000000e+00 : f32
    %115 = vector.broadcast %cst_55 : f32 to vector<16x128xf32>
    %116 = arith.maximumf %114, %115 : vector<16x128xf32>
    %117 = vector.broadcast %77 : vector<16x1xf32> to vector<16x128xf32>
    %118 = arith.mulf %117, %116 : vector<16x128xf32>
    %119 = arith.addf %56, %118 : vector<16x128xf32>
    %120 = vector.broadcast %71 : vector<16x1xf32> to vector<16x128xf32>
    %121 = arith.mulf %120, %65 : vector<16x128xf32>
    %122 = vector.broadcast %75 : vector<16x1xf32> to vector<16x128xf32>
    %123 = arith.addf %121, %122 : vector<16x128xf32>
    %124 = vector.broadcast %69 : vector<16x1xf32> to vector<16x128xf32>
    %125 = arith.mulf %124, %54 : vector<16x128xf32>
    %126 = arith.addf %123, %125 : vector<16x128xf32>
    %cst_56 = arith.constant 0.000000e+00 : f32
    %127 = vector.broadcast %cst_56 : f32 to vector<16x128xf32>
    %128 = arith.maximumf %126, %127 : vector<16x128xf32>
    %129 = vector.broadcast %77 : vector<16x1xf32> to vector<16x128xf32>
    %130 = arith.mulf %129, %128 : vector<16x128xf32>
    %131 = arith.addf %67, %130 : vector<16x128xf32>
    %c2_57 = arith.constant 2 : index
    %c0_58 = arith.constant 0 : index
    %c0_59 = arith.constant 0 : index
    %c0_60 = arith.constant 0 : index
    %132 = vector.load %arg3[%c2_57, %c0_58, %c0_59, %c0_60] : memref<3x3x16x1xf32, #tpu.memory_space<vmem>>, vector<1x1x16x1xf32>
    %133 = vector.shape_cast %132 : vector<1x1x16x1xf32> to vector<16x1xf32>
    %c2_61 = arith.constant 2 : index
    %c1_62 = arith.constant 1 : index
    %c0_63 = arith.constant 0 : index
    %c0_64 = arith.constant 0 : index
    %134 = vector.load %arg3[%c2_61, %c1_62, %c0_63, %c0_64] : memref<3x3x16x1xf32, #tpu.memory_space<vmem>>, vector<1x1x16x1xf32>
    %135 = vector.shape_cast %134 : vector<1x1x16x1xf32> to vector<16x1xf32>
    %c2_65 = arith.constant 2 : index
    %c2_66 = arith.constant 2 : index
    %c0_67 = arith.constant 0 : index
    %c0_68 = arith.constant 0 : index
    %136 = vector.load %arg3[%c2_65, %c2_66, %c0_67, %c0_68] : memref<3x3x16x1xf32, #tpu.memory_space<vmem>>, vector<1x1x16x1xf32>
    %137 = vector.shape_cast %136 : vector<1x1x16x1xf32> to vector<16x1xf32>
    %c2_69 = arith.constant 2 : index
    %c0_70 = arith.constant 0 : index
    %c0_71 = arith.constant 0 : index
    %138 = vector.load %arg4[%c2_69, %c0_70, %c0_71] : memref<3x16x1xf32, #tpu.memory_space<vmem>>, vector<1x16x1xf32>
    %139 = vector.shape_cast %138 : vector<1x16x1xf32> to vector<16x1xf32>
    %c0_72 = arith.constant 0 : index
    %c2_73 = arith.constant 2 : index
    %c0_74 = arith.constant 0 : index
    %c0_75 = arith.constant 0 : index
    %140 = vector.load %arg5[%c0_72, %c2_73, %c0_74, %c0_75] : memref<1x3x16x1xf32, #tpu.memory_space<vmem>>, vector<1x1x16x1xf32>
    %141 = vector.shape_cast %140 : vector<1x1x16x1xf32> to vector<16x1xf32>
    %142 = vector.broadcast %135 : vector<16x1xf32> to vector<16x128xf32>
    %143 = arith.mulf %142, %86 : vector<16x128xf32>
    %144 = vector.broadcast %139 : vector<16x1xf32> to vector<16x128xf32>
    %145 = arith.addf %143, %144 : vector<16x128xf32>
    %146 = vector.broadcast %137 : vector<16x1xf32> to vector<16x128xf32>
    %147 = arith.mulf %146, %101 : vector<16x128xf32>
    %148 = arith.addf %145, %147 : vector<16x128xf32>
    %cst_76 = arith.constant 0.000000e+00 : f32
    %149 = vector.broadcast %cst_76 : f32 to vector<16x128xf32>
    %150 = arith.maximumf %148, %149 : vector<16x128xf32>
    %151 = vector.broadcast %141 : vector<16x1xf32> to vector<16x128xf32>
    %152 = arith.mulf %151, %150 : vector<16x128xf32>
    %153 = arith.addf %89, %152 : vector<16x128xf32>
    %154 = vector.broadcast %135 : vector<16x1xf32> to vector<16x128xf32>
    %155 = arith.mulf %154, %101 : vector<16x128xf32>
    %156 = vector.broadcast %139 : vector<16x1xf32> to vector<16x128xf32>
    %157 = arith.addf %155, %156 : vector<16x128xf32>
    %158 = vector.broadcast %133 : vector<16x1xf32> to vector<16x128xf32>
    %159 = arith.mulf %158, %86 : vector<16x128xf32>
    %160 = arith.addf %157, %159 : vector<16x128xf32>
    %161 = vector.broadcast %137 : vector<16x1xf32> to vector<16x128xf32>
    %162 = arith.mulf %161, %116 : vector<16x128xf32>
    %163 = arith.addf %160, %162 : vector<16x128xf32>
    %cst_77 = arith.constant 0.000000e+00 : f32
    %164 = vector.broadcast %cst_77 : f32 to vector<16x128xf32>
    %165 = arith.maximumf %163, %164 : vector<16x128xf32>
    %166 = vector.broadcast %141 : vector<16x1xf32> to vector<16x128xf32>
    %167 = arith.mulf %166, %165 : vector<16x128xf32>
    %168 = arith.addf %104, %167 : vector<16x128xf32>
    %169 = vector.broadcast %135 : vector<16x1xf32> to vector<16x128xf32>
    %170 = arith.mulf %169, %116 : vector<16x128xf32>
    %171 = vector.broadcast %139 : vector<16x1xf32> to vector<16x128xf32>
    %172 = arith.addf %170, %171 : vector<16x128xf32>
    %173 = vector.broadcast %133 : vector<16x1xf32> to vector<16x128xf32>
    %174 = arith.mulf %173, %101 : vector<16x128xf32>
    %175 = arith.addf %172, %174 : vector<16x128xf32>
    %176 = vector.broadcast %137 : vector<16x1xf32> to vector<16x128xf32>
    %177 = arith.mulf %176, %128 : vector<16x128xf32>
    %178 = arith.addf %175, %177 : vector<16x128xf32>
    %cst_78 = arith.constant 0.000000e+00 : f32
    %179 = vector.broadcast %cst_78 : f32 to vector<16x128xf32>
    %180 = arith.maximumf %178, %179 : vector<16x128xf32>
    %181 = vector.broadcast %141 : vector<16x1xf32> to vector<16x128xf32>
    %182 = arith.mulf %181, %180 : vector<16x128xf32>
    %183 = arith.addf %119, %182 : vector<16x128xf32>
    %184 = vector.broadcast %135 : vector<16x1xf32> to vector<16x128xf32>
    %185 = arith.mulf %184, %128 : vector<16x128xf32>
    %186 = vector.broadcast %139 : vector<16x1xf32> to vector<16x128xf32>
    %187 = arith.addf %185, %186 : vector<16x128xf32>
    %188 = vector.broadcast %133 : vector<16x1xf32> to vector<16x128xf32>
    %189 = arith.mulf %188, %116 : vector<16x128xf32>
    %190 = arith.addf %187, %189 : vector<16x128xf32>
    %cst_79 = arith.constant 0.000000e+00 : f32
    %191 = vector.broadcast %cst_79 : f32 to vector<16x128xf32>
    %192 = arith.maximumf %190, %191 : vector<16x128xf32>
    %193 = vector.broadcast %141 : vector<16x1xf32> to vector<16x128xf32>
    %194 = arith.mulf %193, %192 : vector<16x128xf32>
    %195 = arith.addf %131, %194 : vector<16x128xf32>
    %c0_80 = arith.constant 0 : index
    %c0_81 = arith.constant 0 : index
    %c0_82 = arith.constant 0 : index
    %c0_83 = arith.constant 0 : index
    %196 = vector.load %arg6[%c0_80, %c0_81, %c0_82, %c0_83] : memref<1x4x16x128xf32, #tpu.memory_space<vmem>>, vector<1x1x16x128xf32>
    %197 = vector.shape_cast %196 : vector<1x1x16x128xf32> to vector<16x128xf32>
    %198 = vector.shape_cast %153 : vector<16x128xf32> to vector<1x1x16x128xf32>
    tpu.vector_store %arg6[%c0_80, %c0_81, %c0_82, %c0_83], %198 {strides = array<i32>} : memref<1x4x16x128xf32, #tpu.memory_space<vmem>>, vector<1x1x16x128xf32>,
    %c0_84 = arith.constant 0 : index
    %c1_85 = arith.constant 1 : index
    %c0_86 = arith.constant 0 : index
    %c0_87 = arith.constant 0 : index
    %199 = vector.load %arg6[%c0_84, %c1_85, %c0_86, %c0_87] : memref<1x4x16x128xf32, #tpu.memory_space<vmem>>, vector<1x1x16x128xf32>
    %200 = vector.shape_cast %199 : vector<1x1x16x128xf32> to vector<16x128xf32>
    %201 = vector.shape_cast %168 : vector<16x128xf32> to vector<1x1x16x128xf32>
    tpu.vector_store %arg6[%c0_84, %c1_85, %c0_86, %c0_87], %201 {strides = array<i32>} : memref<1x4x16x128xf32, #tpu.memory_space<vmem>>, vector<1x1x16x128xf32>,
    %c0_88 = arith.constant 0 : index
    %c2_89 = arith.constant 2 : index
    %c0_90 = arith.constant 0 : index
    %c0_91 = arith.constant 0 : index
    %202 = vector.load %arg6[%c0_88, %c2_89, %c0_90, %c0_91] : memref<1x4x16x128xf32, #tpu.memory_space<vmem>>, vector<1x1x16x128xf32>
    %203 = vector.shape_cast %202 : vector<1x1x16x128xf32> to vector<16x128xf32>
    %204 = vector.shape_cast %183 : vector<16x128xf32> to vector<1x1x16x128xf32>
    tpu.vector_store %arg6[%c0_88, %c2_89, %c0_90, %c0_91], %204 {strides = array<i32>} : memref<1x4x16x128xf32, #tpu.memory_space<vmem>>, vector<1x1x16x128xf32>,
    %c0_92 = arith.constant 0 : index
    %c3_93 = arith.constant 3 : index
    %c0_94 = arith.constant 0 : index
    %c0_95 = arith.constant 0 : index
    %205 = vector.load %arg6[%c0_92, %c3_93, %c0_94, %c0_95] : memref<1x4x16x128xf32, #tpu.memory_space<vmem>>, vector<1x1x16x128xf32>
    %206 = vector.shape_cast %205 : vector<1x1x16x128xf32> to vector<16x128xf32>
    %207 = vector.shape_cast %195 : vector<16x128xf32> to vector<1x1x16x128xf32>
    tpu.vector_store %arg6[%c0_92, %c3_93, %c0_94, %c0_95], %207 {strides = array<i32>} : memref<1x4x16x128xf32, #tpu.memory_space<vmem>>, vector<1x1x16x128xf32>,
    return
  }
  func.func @transform_0(%arg0: i32, %arg1: i32) -> (i32, i32, i32, i32) {
    %c0_i32 = arith.constant 0 : i32
    %c0_i32_0 = arith.constant 0 : i32
    %c0_i32_1 = arith.constant 0 : i32
    return %arg0, %c0_i32, %c0_i32_0, %arg1 : i32, i32, i32, i32
  }
  func.func @transform_1(%arg0: i32, %arg1: i32) -> (i32, i32, i32, i32) {
    %c0_i32 = arith.constant 0 : i32
    %c0_i32_0 = arith.constant 0 : i32
    %c0_i32_1 = arith.constant 0 : i32
    %c0_i32_2 = arith.constant 0 : i32
    %c0_i32_3 = arith.constant 0 : i32
    return %c0_i32, %c0_i32_0, %c0_i32_1, %c0_i32_2 : i32, i32, i32, i32
  }
  func.func @transform_2(%arg0: i32, %arg1: i32) -> (i32, i32, i32) {
    %c0_i32 = arith.constant 0 : i32
    %c0_i32_0 = arith.constant 0 : i32
    %c0_i32_1 = arith.constant 0 : i32
    %c0_i32_2 = arith.constant 0 : i32
    return %c0_i32, %c0_i32_0, %c0_i32_1 : i32, i32, i32
  }
  func.func @transform_3(%arg0: i32, %arg1: i32) -> (i32, i32, i32, i32) {
    %c0_i32 = arith.constant 0 : i32
    %c0_i32_0 = arith.constant 0 : i32
    %c0_i32_1 = arith.constant 0 : i32
    %c0_i32_2 = arith.constant 0 : i32
    return %arg0, %c0_i32, %c0_i32_0, %c0_i32_1 : i32, i32, i32, i32
  }
  func.func @transform_4(%arg0: i32, %arg1: i32) -> (i32, i32, i32, i32) {
    %c0_i32 = arith.constant 0 : i32
    %c0_i32_0 = arith.constant 0 : i32
    %c0_i32_1 = arith.constant 0 : i32
    return %arg0, %c0_i32, %c0_i32_0, %arg1 : i32, i32, i32, i32
  }
}

</mosaic_0001>

<bundles_post_ra>
// kernel: _lambda_.2
= control target key start
LH: loop header
LB: loop body
LE: loop exit
PB: predicated region body
PF: predicated region fallthrough
CT: control target
= control target key end

     0   :  { %s865_s12 = smov 0   ;;  %s867_s13 = smov 0   ;;  %s1050_s0 = inlined_call_operand.vmem [shape: f32[2,4,16,256], index: 0, kind: input, shape index: {}]   ;;  %s1051_s1 = inlined_call_operand.vmem [shape: f32[3,3,16,1], index: 1, kind: input, shape index: {}]   ;;  %s1052_s2 = inlined_call_operand.vmem [shape: f32[3,16,1], index: 2, kind: input, shape index: {}]   ;;  %s1053_s3 = inlined_call_operand.vmem [shape: f32[2,16,1], index: 3, kind: output, shape index: {}]  }
   0x1   :  { %s869_s14 = smov 0   ;;  %s871_s15 = smov 0  }
   0x2   :  { %s873_s16 = smov 0   ;;  %s875_s17 = smov 0  }
   0x3   :  { %s877_s18 = smov 0  }
   0x4 LB: > { %s22_s19 = sadd.s32 1, %s833_s16  ;;  %s25_s20 = sadd.s32 1, %s837_s17  ;;  %s841_s18 = sphi %s877_s18, %s13_s18   ;;  %s837_s17 = sphi %s875_s17, %s1059_s17   ;;  %s833_s16 = sphi %s873_s16, %s1058_s16   ;;  %s829_s15 = sphi %s871_s15, %s1057_s15   ;;  %s825_s14 = sphi %s869_s14, %s1056_s14   ;;  %s821_s13 = sphi %s867_s13, %s1055_s13   ;;  %s817_s12 = sphi %s865_s12, %s1054_s12  }
   0x5   : > { %p23_p0 = scmp.ge.s32.totalorder %s22_s19, 2  ;;  %p41_p1 = scmp.ne.s32.totalorder %s821_s13, %s817_s12 }
   0x6   : > { %p42_p2 = scmp.eq.s32.totalorder %s841_s18, 0  ;;  %s34_s24 = sadd.s32 1, %s821_s13 }
   0x7   : > { %s1061_s19 = smov (%p23_p0, %s22_s19), 0  ;;  %s1063_s20 = smov (!%p23_p0, %s25_s20), %s837_s17 }
   0x8   : > { %p43_p3 = por %p42_p2, %p41_p1  ;;  %p27_p4 = scmp.ge.s32.totalorder %s1063_s20, 2 }
   0x9   : > { %s30_s21 = ssub.s32 %s833_s16, %s1061_s19  ;;  %p688_p6 = scmp.ge.s32.totalorder %s841_s18, 4 }
   0xa   : > { %s1065_s20 = smov (%p27_p4, %s1063_s20), 0 }
   0xb   : > { %s29_s22 = ssub.s32 %s837_s17, %s1065_s20  ;;  %141 = sbr.rel (%p688_p6) target bundleno = 26 (0x1a), region = 24 }
   0xc   : > { %s31_s23 = sor.u32 %s30_s21, %s29_s22 }
   0xd   : > { %p32_p5 = scmp.eq.s32.totalorder %s31_s23, 0 }
   0xf   : > { %s916_s25 = scalar_select %p32_p5, %s821_s13, %s34_s24  }
  0x10   : > { %144 = sbr.rel (!%p43_p3) target bundleno = 26 (0x1a), region = 28  ;;  %s146_s26 = sand.u32 (%p43_p3), 1, %s821_s13  }
  0x11   : > { %s690_s27 = sshll.u32 (%p43_p3), %s837_s17, 4  ;;  %s689_s28 = sshll.u32 (%p43_p3), %s146_s26, 6 }
  0x12   : > { %s150_s29 = sadd.s32 (%p43_p3), %s833_s16, %s690_s27  ;;  %s148_s7 = scalar_lea.vmem (%p43_p3), [#allocation2], %s689_s28 }
  0x13   : > { %s691_s30 = sshll.u32 (%p43_p3), %s150_s29, 3 }
  0x14   : > { %s152_s6 = scalar_lea.vmem (%p43_p3), %s1050_s0, %s691_s30 }
  0x15   : > { %v195_v0 = vld [vmem:[%s152_s6] sm:$0xff]  ;;  %v197_v1 = vld [vmem:[%s152_s6 + $0x10] sm:$0xff] }
  0x16   : > { %v199_v2 = vld [vmem:[%s152_s6 + $0x20] sm:$0xff]  ;;  %196 = vst [vmem:[%s148_s7] sm:$0xff] %v195_v0  ;;  %198 = vst [vmem:[%s148_s7 + $0x8] sm:$0xff] %v197_v1  ;;  %v201_v3 = vld [vmem:[%s152_s6 + $0x30] sm:$0xff] }
  0x17   : > { %200 = vst [vmem:[%s148_s7 + $0x10] sm:$0xff] %v199_v2  ;;  %v203_v4 = vld [vmem:[%s152_s6 + $0x40] sm:$0xff]  ;;  %v205_v5 = vld [vmem:[%s152_s6 + $0x50] sm:$0xff]  ;;  %202 = vst [vmem:[%s148_s7 + $0x18] sm:$0xff] %v201_v3 }
  0x18   : > { %204 = vst [vmem:[%s148_s7 + $0x20] sm:$0xff] %v203_v4  ;;  %206 = vst [vmem:[%s148_s7 + $0x28] sm:$0xff] %v205_v5  ;;  %v207_v6 = vld [vmem:[%s152_s6 + $0x60] sm:$0xff]  ;;  %v209_v7 = vld [vmem:[%s152_s6 + $0x70] sm:$0xff] }
  0x19   : > { %208 = vst [vmem:[%s148_s7 + $0x30] sm:$0xff] %v207_v6  ;;  %210 = vst [vmem:[%s148_s7 + $0x38] sm:$0xff] %v209_v7 }
  0x1a PF: > { %p692_p7 = scmp.ge.s32.totalorder %s841_s18, 1  ;;  %p215_p8 = scmp.lt.s32.totalorder %s841_s18, 5 }
  0x1c   : > { %p216_p9 = pnand %p692_p7, %p215_p8 }
  0x1d   : > { %s222_s8 = sand.u32 (!%p216_p9), 1, %s817_s12   ;;  %p245_p10 = scmp.lt.s32.totalorder (!%p216_p9), %s829_s15, 1 }
  0x1e   : > { %219 = sbr.rel (%p216_p9) target bundleno = 377 (0x179), region = 66  ;;  %s693_s9 = sshll.u32 (!%p216_p9), %s222_s8, 6 }
  0x1f   : > { %s935_s23 = scalar_lea.vmem (!%p216_p9), [#allocation2], %s693_s9  ;;  %p696_p11 = scmp.ne.s32.totalorder (!%p216_p9), %s825_s14, 0 }
  0x23   : > { %s1067_s15 = smov (!%p245_p10, %s829_s15), 1  ;;  %253 = sbr.rel (%p696_p11) target bundleno = 42 (0x2a), region = 74 }
  0x24   : > { %s726_s10 = sshll.u32 %s1067_s15, 4 }
  0x25   : > { %s933_s22 = scalar_lea.vmem %s1053_s3, %s726_s10 }
  0x28   : > { %vm254_vm0 = vcmask 7168   ;;  %v843_v8 = vmov 0.0  }
  0x29   : > { %255 = vst.msk [vmem:[%s933_s22] sm:$0xff] %vm254_vm0, %v843_v8  ;;  %256 = vst.msk [vmem:[%s933_s22 + $0x8] sm:$0xff] %vm254_vm0, %v843_v8 }
  0x2a PF: > { %v276_v9 = vld [vmem:[%s1052_s2] sm:$0xff]  ;;  %v703_v10 = vld [vmem:[%s1051_s1 + $0x10] sm:$0xff]  ;;  %v844_v11 = vmov 0   ;;  %v277_v12 = vld [vmem:[%s1052_s2 + $0x8] sm:$0xff]  ;;  %vm598_vm1 = vcmask 7168   ;;  %p723_p12 = scmp.ne.s32.totalorder %s825_s14, 1 }
  0x2b   : > { %786 = vset.pattern.permute.xlu1 %v844_v11  ;;  %785 = vset.pattern.permute.xlu0 %v844_v11  ;;  %v704_v13 = vld [vmem:[%s1051_s1 + $0x18] sm:$0xff]  ;;  %v269_v14 = vld [vmem:[%s1051_s1 + $0x8] sm:$0xff]  ;;  %v268_v15 = vld [vmem:[%s1051_s1] sm:$0xff] }
  0x2c   : > { %292 = vperm.xlu1 %786, %v276_v9   ;;  %280 = vperm.xlu0 %785, %v703_v10   ;;  %v706_v16 = vld [vmem:[%s1051_s1 + $0x28] sm:$0xff]  ;;  %v705_v17 = vld [vmem:[%s1051_s1 + $0x20] sm:$0xff]  ;;  %v714_v20 = vld [vmem:[%s1052_s2 + $0x18] sm:$0xff] }
  0x2d   : > { %v710_v18 = vld [vmem:[%s1051_s1 + $0x48] sm:$0xff]  ;;  %v709_v19 = vld [vmem:[%s1051_s1 + $0x40] sm:$0xff]  ;;  %v713_v21 = vld [vmem:[%s1052_s2 + $0x10] sm:$0xff] }
  0x2e   : > { %v708_v22 = vld [vmem:[%s1051_s1 + $0x38] sm:$0xff]  ;;  %v707_v23 = vld [vmem:[%s1051_s1 + $0x30] sm:$0xff]  ;;  %v722_v28 = vld [vmem:[%s1052_s2 + $0x28] sm:$0xff] }
  0x2f   : > { %v712_v24 = vld [vmem:[%s1051_s1 + $0x58] sm:$0xff]  ;;  %v711_v25 = vld [vmem:[%s1051_s1 + $0x50] sm:$0xff]  ;;  %v721_v29 = vld [vmem:[%s1052_s2 + $0x20] sm:$0xff] }
  0x30   : > { %297 = vperm.xlu1 %786, %v277_v12   ;;  %285 = vperm.xlu0 %785, %v704_v13   ;;  %v718_v26 = vld [vmem:[%s1051_s1 + $0x78] sm:$0xff]  ;;  %v717_v27 = vld [vmem:[%s1051_s1 + $0x70] sm:$0xff]  ;;  %v720_v30 = vld [vmem:[%s1051_s1 + $0x88] sm:$0xff] }
  0x31   : > { %v719_v31 = vld [vmem:[%s1051_s1 + $0x80] sm:$0xff]  ;;  %v716_v32 = vld [vmem:[%s1051_s1 + $0x68] sm:$0xff]  ;;  %v698_v36 = vld [vmem:[%s935_s23 + $0x18] sm:$0xff] }
  0x32   : > { %v715_v33 = vld [vmem:[%s1051_s1 + $0x60] sm:$0xff]  ;;  %v700_v37 = vld [vmem:[%s935_s23 + $0x28] sm:$0xff]  ;;  %v697_v38 = vld [vmem:[%s935_s23 + $0x10] sm:$0xff] }
  0x33   : > { %v699_v39 = vld [vmem:[%s935_s23 + $0x20] sm:$0xff]  ;;  %v258_v43 = vld [vmem:[%s935_s23 + $0x8] sm:$0xff]  ;;  %v701_v49 = vld [vmem:[%s935_s23 + $0x30] sm:$0xff] }
  0x34   : > { %331 = vperm.xlu1 %786, %v269_v14   ;;  %326 = vperm.xlu0 %785, %v268_v15   ;;  %v257_v42 = vld [vmem:[%s935_s23] sm:$0xff]  ;;  %v702_v53 = vld [vmem:[%s935_s23 + $0x38] sm:$0xff] }
  0x38   : > { %309 = vperm.xlu1 %786, %v706_v16   ;;  %304 = vperm.xlu0 %785, %v705_v17  }
  0x3c   : > { %393 = vperm.xlu1 %786, %v710_v18   ;;  %388 = vperm.xlu0 %785, %v709_v19  }
  0x40   : > { %405 = vperm.xlu1 %786, %v714_v20   ;;  %400 = vperm.xlu0 %785, %v713_v21  }
  0x44   : > { %439 = vperm.xlu1 %786, %v708_v22   ;;  %434 = vperm.xlu0 %785, %v707_v23  }
  0x48   : > { %417 = vperm.xlu1 %786, %v712_v24   ;;  %412 = vperm.xlu0 %785, %v711_v25  }
  0x4c   : > { %501 = vperm.xlu1 %786, %v718_v26   ;;  %496 = vperm.xlu0 %785, %v717_v27  }
  0x50   : > { %513 = vperm.xlu1 %786, %v722_v28   ;;  %508 = vperm.xlu0 %785, %v721_v29  }
  0x54   : > { %525 = vperm.xlu1 %786, %v720_v30   ;;  %520 = vperm.xlu0 %785, %v719_v31  }
  0x58   : > { %547 = vperm.xlu1 %786, %v716_v32   ;;  %542 = vperm.xlu0 %785, %v715_v33  }
  0xa7   : > { %v293_v34 = vpop.permute.xlu1 %292  ;;  %v281_v35 = vpop.permute.xlu0 %280 }
  0xa8   : > { %v320_v46 = vmul.f32 %v697_v38, %v281_v35  ;;  %v346_v47 = vmul.f32 %v699_v39, %v281_v35  ;;  %v288_v48 = vmul.f32 %v281_v35, %v257_v42  ;;  %v362_v60 = vmul.f32 %v701_v49, %v281_v35 }
  0xaa   : > { %v322_v61 = vadd.f32 %v320_v46, %v293_v34  ;;  %v348_v62 = vadd.f32 %v346_v47, %v293_v34  ;;  %v300_v0 = vadd.f32 %v293_v34, %v288_v48  ;;  %v364_v28 = vadd.f32 %v362_v60, %v293_v34 }
  0xab   : > { %v298_v40 = vpop.permute.xlu1 %297  ;;  %v286_v41 = vpop.permute.xlu0 %285 }
  0xac   : > { %v321_v44 = vmul.f32 %v698_v36, %v286_v41  ;;  %v347_v45 = vmul.f32 %v700_v37, %v286_v41  ;;  %v289_v51 = vmul.f32 %v286_v41, %v258_v43  ;;  %v363_v63 = vmul.f32 %v702_v53, %v286_v41 }
  0xae   : > { %v323_v57 = vadd.f32 %v321_v44, %v298_v40  ;;  %v349_v58 = vadd.f32 %v347_v45, %v298_v40  ;;  %v301_v5 = vadd.f32 %v298_v40, %v289_v51  ;;  %v365_v18 = vadd.f32 %v363_v63, %v298_v40 }
  0xaf   : > { %v332_v50 = vpop.permute.xlu1 %331  ;;  %v327_v52 = vpop.permute.xlu0 %326 }
  0xb0   : > { %v335_v54 = vmul.f32 %v332_v50, %v258_v43  ;;  %v351_v55 = vmul.f32 %v698_v36, %v332_v50  ;;  %v334_v56 = vmul.f32 %v327_v52, %v257_v42  ;;  %v350_v59 = vmul.f32 %v697_v38, %v327_v52 }
  0xb1   : > { %v367_v3 = vmul.f32 %v700_v37, %v332_v50  ;;  %v366_v19 = vmul.f32 %v699_v39, %v327_v52 }
  0xb2   : > { %v337_v1 = vadd.f32 %v335_v54, %v323_v57  ;;  %v353_v2 = vadd.f32 %v351_v55, %v349_v58  ;;  %v336_v7 = vadd.f32 %v334_v56, %v322_v61  ;;  %v352_v11 = vadd.f32 %v350_v59, %v348_v62 }
  0xb3   : > { %v310_v4 = vpop.permute.xlu1 %309  ;;  %v305_v6 = vpop.permute.xlu0 %304  ;;  %v369_v27 = vadd.f32 %v367_v3, %v365_v18  ;;  %v368_v33 = vadd.f32 %v366_v19, %v364_v28 }
  0xb4   : > { %v313_v8 = vmul.f32 %v698_v36, %v310_v4  ;;  %v339_v9 = vmul.f32 %v700_v37, %v310_v4  ;;  %v355_v10 = vmul.f32 %v702_v53, %v310_v4  ;;  %v312_v12 = vmul.f32 %v697_v38, %v305_v6 }
  0xb5   : > { %v338_v13 = vmul.f32 %v699_v39, %v305_v6  ;;  %v354_v14 = vmul.f32 %v701_v49, %v305_v6  ;;  %v371_v37 = vmax.f32 %v369_v27, 0.0  ;;  %v370_v44 = vmax.f32 %v368_v33, 0.0 }
  0xb6   : > { %v315_v15 = vadd.f32 %v313_v8, %v301_v5  ;;  %v341_v16 = vadd.f32 %v339_v9, %v337_v1  ;;  %v357_v17 = vadd.f32 %v355_v10, %v353_v2  ;;  %v314_v20 = vadd.f32 %v312_v12, %v300_v0 }
  0xb7   : > { %v340_v21 = vadd.f32 %v338_v13, %v336_v7  ;;  %v356_v22 = vadd.f32 %v354_v14, %v352_v11  ;;  %v394_v23 = vpop.permute.xlu1 %393  ;;  %v389_v24 = vpop.permute.xlu0 %388 }
  0xb8   : > { %v343_v25 = vmax.f32 %v341_v16, 0.0  ;;  %v359_v26 = vmax.f32 %v357_v17, 0.0  ;;  %v317_v29 = vmax.f32 %v315_v15, 0.0  ;;  %v316_v30 = vmax.f32 %v314_v20, 0.0 }
  0xb9   : > { %v342_v31 = vmax.f32 %v340_v21, 0.0  ;;  %v358_v32 = vmax.f32 %v356_v22, 0.0  ;;  %v471_v34 = vmul.f32 %v394_v23, %v371_v37  ;;  %v470_v52 = vmul.f32 %v389_v24, %v370_v44 }
  0xba   : > { %v429_v38 = vmul.f32 %v394_v23, %v343_v25  ;;  %v455_v40 = vmul.f32 %v394_v23, %v359_v26  ;;  %v345_v39 = vadd.f32 %v343_v25, %v317_v29  ;;  %v397_v42 = vmul.f32 %v394_v23, %v317_v29 }
  0xbb   : > { %v406_v35 = vpop.permute.xlu1 %405  ;;  %v401_v36 = vpop.permute.xlu0 %400  ;;  %v344_v41 = vadd.f32 %v342_v31, %v316_v30  ;;  %v428_v43 = vmul.f32 %v389_v24, %v342_v31  ;;  %v396_v45 = vmul.f32 %v389_v24, %v316_v30  ;;  %v454_v46 = vmul.f32 %v389_v24, %v358_v32 }
  0xbc   : > { %v431_v53 = vadd.f32 %v429_v38, %v406_v35  ;;  %v457_v54 = vadd.f32 %v455_v40, %v406_v35  ;;  %v361_v56 = vadd.f32 %v359_v26, %v345_v39  ;;  %v409_v58 = vadd.f32 %v406_v35, %v397_v42 }
  0xbd   : > { %v360_v57 = vadd.f32 %v358_v32, %v344_v41  ;;  %v430_v59 = vadd.f32 %v428_v43, %v401_v36  ;;  %v408_v60 = vadd.f32 %v401_v36, %v396_v45  ;;  %v456_v61 = vadd.f32 %v454_v46, %v401_v36 }
  0xbe   : > { %v473_v20 = vadd.f32 %v471_v34, %v406_v35  ;;  %v472_v22 = vadd.f32 %v470_v52, %v401_v36  ;;  %v373_v23 = vadd.f32 %v371_v37, %v361_v56 }
  0xbf   : > { %v440_v47 = vpop.permute.xlu1 %439  ;;  %v435_v48 = vpop.permute.xlu0 %434  ;;  %v372_v24 = vadd.f32 %v370_v44, %v360_v57 }
  0xc0   : > { %v443_v49 = vmul.f32 %v440_v47, %v317_v29  ;;  %v459_v50 = vmul.f32 %v440_v47, %v343_v25  ;;  %v442_v51 = vmul.f32 %v435_v48, %v316_v30  ;;  %v458_v55 = vmul.f32 %v435_v48, %v342_v31 }
  0xc1   : > { %v475_v10 = vmul.f32 %v440_v47, %v359_v26  ;;  %v474_v14 = vmul.f32 %v435_v48, %v358_v32 }
  0xc2   : > { %v445_v62 = vadd.f32 %v443_v49, %v431_v53  ;;  %v461_v63 = vadd.f32 %v459_v50, %v457_v54  ;;  %v444_v2 = vadd.f32 %v442_v51, %v430_v59  ;;  %v460_v6 = vadd.f32 %v458_v55, %v456_v61 }
  0xc3   : > { %v418_v0 = vpop.permute.xlu1 %417  ;;  %v413_v1 = vpop.permute.xlu0 %412  ;;  %v477_v27 = vadd.f32 %v475_v10, %v473_v20 }
  0xc4   : > { %v421_v3 = vmul.f32 %v418_v0, %v343_v25  ;;  %v447_v4 = vmul.f32 %v418_v0, %v359_v26  ;;  %v463_v5 = vmul.f32 %v418_v0, %v371_v37  ;;  %v420_v7 = vmul.f32 %v413_v1, %v342_v31 }
  0xc5   : > { %v446_v8 = vmul.f32 %v413_v1, %v358_v32  ;;  %v462_v9 = vmul.f32 %v413_v1, %v370_v44  ;;  %v476_v26 = vadd.f32 %v474_v14, %v472_v22  ;;  %v479_v42 = vmax.f32 %v477_v27, 0.0 }
  0xc6   : > { %v423_v11 = vadd.f32 %v421_v3, %v409_v58  ;;  %v449_v12 = vadd.f32 %v447_v4, %v445_v62  ;;  %v465_v13 = vadd.f32 %v463_v5, %v461_v63  ;;  %v422_v15 = vadd.f32 %v420_v7, %v408_v60 }
  0xc7   : > { %v448_v16 = vadd.f32 %v446_v8, %v444_v2  ;;  %v464_v17 = vadd.f32 %v462_v9, %v460_v6  ;;  %v502_v18 = vpop.permute.xlu1 %501  ;;  %v497_v19 = vpop.permute.xlu0 %496  ;;  %v478_v36 = vmax.f32 %v476_v26, 0.0 }
  0xc8   : > { %v425_v21 = vmax.f32 %v423_v11, 0.0  ;;  %v424_v25 = vmax.f32 %v422_v15, 0.0  ;;  %v451_v28 = vmax.f32 %v449_v12, 0.0  ;;  %v467_v29 = vmax.f32 %v465_v13, 0.0 }
  0xc9   : > { %v450_v30 = vmax.f32 %v448_v16, 0.0  ;;  %v466_v38 = vmax.f32 %v464_v17, 0.0  ;;  %v579_v51 = vmul.f32 %v502_v18, %v479_v42  ;;  %v578_v52 = vmul.f32 %v497_v19, %v478_v36 }
  0xca   : > { %v427_v31 = vadd.f32 %v425_v21, %v373_v23  ;;  %v426_v33 = vadd.f32 %v424_v25, %v372_v24  ;;  %v505_v39 = vmul.f32 %v502_v18, %v425_v21  ;;  %v504_v41 = vmul.f32 %v497_v19, %v424_v25 }
  0xcb   : > { %v514_v32 = vpop.permute.xlu1 %513  ;;  %v509_v40 = vpop.permute.xlu0 %508  ;;  %v537_v43 = vmul.f32 %v502_v18, %v451_v28  ;;  %v563_v35 = vmul.f32 %v502_v18, %v467_v29  ;;  %v536_v45 = vmul.f32 %v497_v19, %v450_v30  ;;  %v562_v46 = vmul.f32 %v497_v19, %v466_v38 }
  0xcc   : > { %v453_v37 = vadd.f32 %v451_v28, %v427_v31  ;;  %v452_v44 = vadd.f32 %v450_v30, %v426_v33  ;;  %v517_v34 = vadd.f32 %v514_v32, %v505_v39  ;;  %v516_v53 = vadd.f32 %v509_v40, %v504_v41 }
  0xcd   : > { %v539_v54 = vadd.f32 %v537_v43, %v514_v32  ;;  %v565_v55 = vadd.f32 %v563_v35, %v514_v32  ;;  %v538_v56 = vadd.f32 %v536_v45, %v509_v40  ;;  %v564_v58 = vadd.f32 %v562_v46, %v509_v40  ;;  %v591_v35 = vld [vmem:[%s933_s22 + $0x8] sm:$0xff]  ;;  %v590_v45 = vld [vmem:[%s933_s22] sm:$0xff] }
  0xce   : > { %v469_v62 = vadd.f32 %v467_v29, %v453_v37  ;;  %v468_v63 = vadd.f32 %v466_v38, %v452_v44  ;;  %v581_v16 = vadd.f32 %v579_v51, %v514_v32  ;;  %v580_v20 = vadd.f32 %v578_v52, %v509_v40 }
  0xcf   : > { %v526_v47 = vpop.permute.xlu1 %525  ;;  %v521_v48 = vpop.permute.xlu0 %520 }
  0xd0   : > { %v529_v49 = vmul.f32 %v526_v47, %v451_v28  ;;  %v528_v50 = vmul.f32 %v521_v48, %v450_v30  ;;  %v555_v0 = vmul.f32 %v526_v47, %v467_v29  ;;  %v571_v1 = vmul.f32 %v526_v47, %v479_v42 }
  0xd1   : > { %v554_v4 = vmul.f32 %v521_v48, %v466_v38  ;;  %v570_v5 = vmul.f32 %v521_v48, %v478_v36  ;;  %v481_v18 = vadd.f32 %v479_v42, %v469_v62 }
  0xd2   : > { %v531_v57 = vadd.f32 %v529_v49, %v517_v34  ;;  %v530_v59 = vadd.f32 %v528_v50, %v516_v53 }
  0xd3   : > { %v548_v60 = vpop.permute.xlu1 %547  ;;  %v543_v61 = vpop.permute.xlu0 %542 }
  0xd4   : > { %v551_v2 = vmul.f32 %v548_v60, %v425_v21  ;;  %v567_v3 = vmul.f32 %v548_v60, %v451_v28  ;;  %v550_v6 = vmul.f32 %v543_v61, %v424_v25  ;;  %v566_v7 = vmul.f32 %v543_v61, %v450_v30 }
  0xd5   : > { %v533_v8 = vmax.f32 %v531_v57, 0.0  ;;  %v583_v11 = vmul.f32 %v548_v60, %v467_v29  ;;  %v532_v12 = vmax.f32 %v530_v59, 0.0  ;;  %v582_v15 = vmul.f32 %v543_v61, %v466_v38 }
  0xd6   : > { %v553_v9 = vadd.f32 %v551_v2, %v539_v54  ;;  %v569_v10 = vadd.f32 %v567_v3, %v565_v55  ;;  %v552_v13 = vadd.f32 %v550_v6, %v538_v56  ;;  %v568_v14 = vadd.f32 %v566_v7, %v564_v58 }
  0xd7   : > { %v480_v21 = vadd.f32 %v478_v36, %v468_v63  ;;  %v535_v24 = vadd.f32 %v533_v8, %v481_v18  ;;  %v585_v25 = vadd.f32 %v583_v11, %v581_v16  ;;  %v584_v29 = vadd.f32 %v582_v15, %v580_v20 }
  0xd8   : > { %v557_v17 = vadd.f32 %v555_v0, %v553_v9  ;;  %v573_v19 = vadd.f32 %v571_v1, %v569_v10  ;;  %v556_v22 = vadd.f32 %v554_v4, %v552_v13  ;;  %v572_v23 = vadd.f32 %v570_v5, %v568_v14 }
  0xd9   : > { %v534_v28 = vadd.f32 %v532_v12, %v480_v21  ;;  %v587_v39 = vmax.f32 %v585_v25, 0.0  ;;  %v586_v41 = vmax.f32 %v584_v29, 0.0 }
  0xda   : > { %v559_v27 = vmax.f32 %v557_v17, 0.0  ;;  %v558_v30 = vmax.f32 %v556_v22, 0.0  ;;  %v575_v31 = vmax.f32 %v573_v19, 0.0  ;;  %v574_v38 = vmax.f32 %v572_v23, 0.0 }
  0xdc   : > { %v561_v26 = vadd.f32 %v559_v27, %v535_v24  ;;  %v560_v33 = vadd.f32 %v558_v30, %v534_v28 }
  0xde   : > { %v577_v32 = vadd.f32 %v575_v31, %v561_v26  ;;  %v576_v40 = vadd.f32 %v574_v38, %v560_v33 }
  0xe0   : > { %v589_v42 = vadd.f32 %v587_v39, %v577_v32  ;;  %v588_v43 = vadd.f32 %v586_v41, %v576_v40 }
  0xe2   : > { %594 = vadd.xlane.f32.xlu1 %v589_v42  ;;  %592 = vadd.xlane.f32.xlu0 %v588_v43 }
 0x16a   : > { %604 = sbr.rel (%p723_p12) target bundleno = 377 (0x179), region = 78 }
 0x16b   : > { %v595_v36 = vpop.xlane.xlu1 %594  ;;  %v593_v44 = vpop.xlane.xlu0 %592 }
 0x16c   : > { %v597_v37 = vadd.f32 %v595_v36, %v591_v35  ;;  %v596_v46 = vadd.f32 %v593_v44, %v590_v45 }
 0x16e   : > { %600 = vst.msk [vmem:[%s933_s22 + $0x8] sm:$0xff] %vm598_vm1, %v597_v37  ;;  %599 = vst.msk [vmem:[%s933_s22] sm:$0xff] %vm598_vm1, %v596_v46 }
 0x175   : > { %v605_v47 = vld [vmem:[%s933_s22] sm:$0xff]  ;;  %v606_v48 = vld [vmem:[%s933_s22 + $0x8] sm:$0xff] }
 0x176   : > { %v607_v34 = vmul.f32 0.00032552084, %v605_v47  ;;  %v608_v49 = vmul.f32 0.00032552084, %v606_v48 }
 0x178   : > { %609 = vst.msk [vmem:[%s933_s22] sm:$0xff] %vm598_vm1, %v607_v34  ;;  %610 = vst.msk [vmem:[%s933_s22 + $0x8] sm:$0xff] %vm598_vm1, %v608_v49 }
 0x179 PF: > { %s13_s18 = sadd.s32 1, %s841_s18   ;;  %s1054_s12 = smov %s821_s13 }
 0x17a   : > { %p10_p13 = scmp.ge.s32.totalorder %s13_s18, 6   ;;  %s1055_s13 = smov %s916_s25 }
 0x17b   : > { %s1056_s14 = smov %s833_s16  ;;  %s1057_s15 = smov %s837_s17 }
 0x17c   : > { %s1058_s16 = smov %s1061_s19  ;;  %s1059_s17 = smov %s1065_s20 }
 0x17d   :  { %12 = sbr.rel (!%p10_p13) target bundleno = 4 (0x4), region = 126 }

// kernel: _lambda_.3
= control target key start
LH: loop header
LB: loop body
LE: loop exit
PB: predicated region body
PF: predicated region fallthrough
CT: control target
= control target key end

     0   :  { %s1041_s15 = smov 0   ;;  %s1043_s16 = smov 0   ;;  %s1325_s0 = inlined_call_operand.vmem [shape: f32[2,4,16,256], index: 0, kind: input, shape index: {}]   ;;  %s1326_s1 = inlined_call_operand.vmem [shape: f32[3,3,16,1], index: 1, kind: input, shape index: {}]   ;;  %s1327_s2 = inlined_call_operand.vmem [shape: f32[3,16,1], index: 2, kind: input, shape index: {}]   ;;  %s1328_s3 = inlined_call_operand.vmem [shape: f32[2,3,16,1], index: 3, kind: input, shape index: {}]   ;;  %s1329_s4 = inlined_call_operand.vmem [shape: f32[2,4,16,256], index: 4, kind: output, shape index: {}]  }
   0x1   :  { %s1045_s17 = smov 0   ;;  %s1047_s18 = smov 0  }
   0x2   :  { %s1049_s19 = smov 0   ;;  %s1051_s20 = smov 0  }
   0x3   :  { %s1053_s21 = smov 0  }
   0x4 LB: > { %s23_s22 = sadd.s32 1, %s1005_s19  ;;  %s26_s23 = sadd.s32 1, %s1009_s20  ;;  %s1013_s21 = sphi %s1053_s21, %s14_s21   ;;  %s1009_s20 = sphi %s1051_s20, %s1336_s20   ;;  %s1005_s19 = sphi %s1049_s19, %s1335_s19   ;;  %s1001_s18 = sphi %s1047_s18, %s1334_s18   ;;  %s997_s17 = sphi %s1045_s17, %s1333_s17   ;;  %s993_s16 = sphi %s1043_s16, %s1332_s16   ;;  %s989_s15 = sphi %s1041_s15, %s1331_s15  }
   0x5   : > { %p24_p0 = scmp.ge.s32.totalorder %s23_s22, 2  ;;  %s847_s24 = sadd.s32 4294967295, %s1013_s21  }
   0x6   : > { %p42_p1 = scmp.ne.s32.totalorder %s993_s16, %s989_s15  ;;  %p43_p2 = scmp.eq.s32.totalorder %s1013_s21, 0 }
   0x7   : > { %s1338_s22 = smov (%p24_p0, %s23_s22), 0  ;;  %s1340_s23 = smov (!%p24_p0, %s26_s23), %s1009_s20 }
   0x8   : > { %p28_p3 = scmp.ge.s32.totalorder %s1340_s23, 2  ;;  %p142_p4 = scmp.eq.s32.totalorder %s847_s24, 3 }
   0x9   : > { %s31_s25 = ssub.s32 %s1005_s19, %s1338_s22  ;;  %p44_p5 = por %p43_p2, %p42_p1 }
   0xa   : > { %s1342_s23 = smov (%p28_p3, %s1340_s23), 0  ;;  %p1089_p6 = por %p142_p4, %p42_p1 }
   0xb   : > { %s30_s27 = ssub.s32 %s1009_s20, %s1342_s23  ;;  %s35_s29 = sadd.s32 1, %s993_s16 }
   0xc   : > { %s32_s28 = sor.u32 %s31_s25, %s30_s27  ;;  %p850_p8 = scmp.ge.s32.totalorder %s1013_s21, 4 }
   0xd   : > { %p33_p7 = scmp.eq.s32.totalorder %s32_s28, 0 }
   0xe   : > { %170 = sbr.rel (%p850_p8) target bundleno = 29 (0x1d), region = 24 }
   0xf   : > { %s1097_s30 = scalar_select %p33_p7, %s993_s16, %s35_s29  }
  0x13   : > { %173 = sbr.rel (!%p44_p5) target bundleno = 29 (0x1d), region = 28  ;;  %s175_s5 = sand.u32 (%p44_p5), 1, %s993_s16  }
  0x14   : > { %s852_s6 = sshll.u32 (%p44_p5), %s1009_s20, 4  ;;  %s851_s7 = sshll.u32 (%p44_p5), %s175_s5, 6 }
  0x15   : > { %s179_s8 = sadd.s32 (%p44_p5), %s1005_s19, %s852_s6  ;;  %s177_s13 = scalar_lea.vmem (%p44_p5), [#allocation2], %s851_s7 }
  0x16   : > { %s853_s9 = sshll.u32 (%p44_p5), %s179_s8, 3 }
  0x17   : > { %s181_s12 = scalar_lea.vmem (%p44_p5), %s1325_s0, %s853_s9 }
  0x18   : > { %v224_v0 = vld [vmem:[%s181_s12] sm:$0xff]  ;;  %v226_v1 = vld [vmem:[%s181_s12 + $0x10] sm:$0xff] }
  0x19   : > { %v228_v2 = vld [vmem:[%s181_s12 + $0x20] sm:$0xff]  ;;  %225 = vst [vmem:[%s177_s13] sm:$0xff] %v224_v0  ;;  %227 = vst [vmem:[%s177_s13 + $0x8] sm:$0xff] %v226_v1  ;;  %v230_v3 = vld [vmem:[%s181_s12 + $0x30] sm:$0xff] }
  0x1a   : > { %229 = vst [vmem:[%s177_s13 + $0x10] sm:$0xff] %v228_v2  ;;  %v232_v4 = vld [vmem:[%s181_s12 + $0x40] sm:$0xff]  ;;  %v234_v5 = vld [vmem:[%s181_s12 + $0x50] sm:$0xff]  ;;  %231 = vst [vmem:[%s177_s13 + $0x18] sm:$0xff] %v230_v3 }
  0x1b   : > { %233 = vst [vmem:[%s177_s13 + $0x20] sm:$0xff] %v232_v4  ;;  %235 = vst [vmem:[%s177_s13 + $0x28] sm:$0xff] %v234_v5  ;;  %v236_v6 = vld [vmem:[%s181_s12 + $0x60] sm:$0xff]  ;;  %v238_v7 = vld [vmem:[%s181_s12 + $0x70] sm:$0xff] }
  0x1c   : > { %237 = vst [vmem:[%s177_s13 + $0x30] sm:$0xff] %v236_v6  ;;  %239 = vst [vmem:[%s177_s13 + $0x38] sm:$0xff] %v238_v7 }
  0x1d PF: > { %p854_p9 = scmp.ge.s32.totalorder %s1013_s21, 1  ;;  %p252_p10 = scmp.lt.s32.totalorder %s1013_s21, 5 }
  0x1f   : > { %p253_p11 = pnand %p854_p9, %p252_p10 }
  0x20   : > { %p288_p12 = scmp.lt.s32.totalorder (!%p253_p11), %s1001_s18, 1  ;;  %s259_s9 = sand.u32 (!%p253_p11), 1, %s989_s15  }
  0x21   : > { %256 = sbr.rel (%p253_p11) target bundleno = 237 (0xed), region = 70  ;;  %s1194_s10 = sshll.u32 (!%p253_p11), %s259_s9, 6 }
  0x22   : > { %s261_s11 = scalar_lea.vmem (!%p253_p11), [#allocation2], %s1194_s10  ;;  %s287_s15 = scalar_lea.vmem (!%p253_p11), [#allocation3], %s1194_s10 }
  0x26   : > { %v312_v8 = vld [vmem:[%s1327_s2] sm:$0xff]  ;;  %v864_v9 = vld [vmem:[%s1326_s1 + $0x10] sm:$0xff]  ;;  %v1015_v10 = vmov 0   ;;  %s289_s28 = scalar_select %p288_p12, %s1001_s18, 1  ;;  %v313_v11 = vld [vmem:[%s1327_s2 + $0x8] sm:$0xff] }
  0x27   : > { %958 = vset.pattern.permute.xlu1 %v1015_v10  ;;  %957 = vset.pattern.permute.xlu0 %v1015_v10  ;;  %v865_v12 = vld [vmem:[%s1326_s1 + $0x18] sm:$0xff]  ;;  %v867_v13 = vld [vmem:[%s1326_s1 + $0x28] sm:$0xff]  ;;  %v866_v14 = vld [vmem:[%s1326_s1 + $0x20] sm:$0xff] }
  0x28   : > { %330 = vperm.xlu1 %958, %v312_v8   ;;  %318 = vperm.xlu0 %957, %v864_v9   ;;  %s899_s8 = smul.u32 48, %s289_s28  ;;  %v304_v15 = vld [vmem:[%s1326_s1] sm:$0xff]  ;;  %v305_v18 = vld [vmem:[%s1326_s1 + $0x8] sm:$0xff]  ;;  %v874_v19 = vld [vmem:[%s1327_s2 + $0x10] sm:$0xff] }
  0x29   : > { %v870_v17 = vld [vmem:[%s1326_s1 + $0x40] sm:$0xff]  ;;  %v871_v20 = vld [vmem:[%s1326_s1 + $0x48] sm:$0xff]  ;;  %v868_v21 = vld [vmem:[%s1326_s1 + $0x30] sm:$0xff] }
  0x2a   : > { %s1131_s24 = scalar_lea.vmem %s1328_s3, %s899_s8  ;;  %v875_v22 = vld [vmem:[%s1327_s2 + $0x18] sm:$0xff]  ;;  %v872_v23 = vld [vmem:[%s1326_s1 + $0x50] sm:$0xff]  ;;  %v884_v27 = vld [vmem:[%s1327_s2 + $0x20] sm:$0xff] }
  0x2b   : > { %v314_v16 = vld [vmem:[%s1131_s24] sm:$0xff]  ;;  %v869_v24 = vld [vmem:[%s1326_s1 + $0x38] sm:$0xff]  ;;  %v880_v25 = vld [vmem:[%s1326_s1 + $0x70] sm:$0xff] }
  0x2c   : > { %335 = vperm.xlu1 %958, %v313_v11   ;;  %323 = vperm.xlu0 %957, %v865_v12   ;;  %v873_v26 = vld [vmem:[%s1326_s1 + $0x58] sm:$0xff]  ;;  %v878_v29 = vld [vmem:[%s1326_s1 + $0x60] sm:$0xff]  ;;  %v885_v30 = vld [vmem:[%s1327_s2 + $0x28] sm:$0xff] }
  0x2d   : > { %v881_v28 = vld [vmem:[%s1326_s1 + $0x78] sm:$0xff]  ;;  %v882_v31 = vld [vmem:[%s1326_s1 + $0x80] sm:$0xff]  ;;  %v879_v32 = vld [vmem:[%s1326_s1 + $0x68] sm:$0xff] }
  0x2e   : > { %v315_v33 = vld [vmem:[%s1131_s24 + $0x8] sm:$0xff]  ;;  %v877_v35 = vld [vmem:[%s1131_s24 + $0x18] sm:$0xff]  ;;  %v876_v36 = vld [vmem:[%s1131_s24 + $0x10] sm:$0xff] }
  0x2f   : > { %v883_v34 = vld [vmem:[%s1326_s1 + $0x88] sm:$0xff]  ;;  %v886_v38 = vld [vmem:[%s1131_s24 + $0x20] sm:$0xff]  ;;  %v858_v43 = vld [vmem:[%s261_s11 + $0x10] sm:$0xff] }
  0x30   : > { %347 = vperm.xlu1 %958, %v867_v13   ;;  %342 = vperm.xlu0 %957, %v866_v14   ;;  %v887_v37 = vld [vmem:[%s1131_s24 + $0x28] sm:$0xff]  ;;  %v860_v44 = vld [vmem:[%s261_s11 + $0x20] sm:$0xff]  ;;  %v862_v45 = vld [vmem:[%s261_s11 + $0x30] sm:$0xff]  ;;  %s895_s24 = sshll.u32 (%p1089_p6), %s1001_s18, 4 }
  0x31   : > { %v293_v50 = vld [vmem:[%s261_s11] sm:$0xff]  ;;  %v859_v51 = vld [vmem:[%s261_s11 + $0x18] sm:$0xff]  ;;  %v861_v53 = vld [vmem:[%s261_s11 + $0x28] sm:$0xff]  ;;  %s699_s12 = sadd.s32 (%p1089_p6), %s997_s17, %s895_s24 }
  0x32   : > { %v863_v60 = vld [vmem:[%s261_s11 + $0x38] sm:$0xff]  ;;  %v294_v0 = vld [vmem:[%s261_s11 + $0x8] sm:$0xff]  ;;  %s896_s13 = sshll.u32 (%p1089_p6), %s699_s12, 3 }
  0x33   : > { %s701_s27 = scalar_lea.vmem (%p1089_p6), %s1329_s4, %s896_s13 }
  0x34   : > { %374 = vperm.xlu1 %958, %v304_v15   ;;  %358 = vperm.xlu0 %957, %v314_v16  }
  0x38   : > { %439 = vperm.xlu1 %958, %v870_v17   ;;  %379 = vperm.xlu0 %957, %v305_v18  }
  0x3c   : > { %451 = vperm.xlu1 %958, %v874_v19   ;;  %444 = vperm.xlu0 %957, %v871_v20  }
  0x40   : > { %497 = vperm.xlu1 %958, %v868_v21   ;;  %456 = vperm.xlu0 %957, %v875_v22  }
  0x44   : > { %463 = vperm.xlu1 %958, %v872_v23   ;;  %502 = vperm.xlu0 %957, %v869_v24  }
  0x48   : > { %568 = vperm.xlu1 %958, %v880_v25   ;;  %468 = vperm.xlu0 %957, %v873_v26  }
  0x4c   : > { %580 = vperm.xlu1 %958, %v884_v27   ;;  %573 = vperm.xlu0 %957, %v881_v28  }
  0x50   : > { %626 = vperm.xlu1 %958, %v878_v29   ;;  %585 = vperm.xlu0 %957, %v885_v30  }
  0x54   : > { %592 = vperm.xlu1 %958, %v882_v31   ;;  %631 = vperm.xlu0 %957, %v879_v32  }
  0x58   : > { %363 = vperm.xlu1 %958, %v315_v33   ;;  %597 = vperm.xlu0 %957, %v883_v34  }
  0x5c   : > { %484 = vperm.xlu1 %958, %v877_v35   ;;  %479 = vperm.xlu0 %957, %v876_v36  }
  0x60   : > { %613 = vperm.xlu1 %958, %v887_v37   ;;  %608 = vperm.xlu0 %957, %v886_v38  }
  0xa3   : > { %v331_v39 = vpop.permute.xlu1 %330  ;;  %v319_v40 = vpop.permute.xlu0 %318 }
  0xa4   : > { %v368_v46 = vmul.f32 %v858_v43, %v319_v40  ;;  %v394_v47 = vmul.f32 %v860_v44, %v319_v40  ;;  %v410_v52 = vmul.f32 %v862_v45, %v319_v40  ;;  %v326_v55 = vmul.f32 %v319_v40, %v293_v50 }
  0xa6   : > { %v370_v56 = vadd.f32 %v368_v46, %v331_v39  ;;  %v396_v57 = vadd.f32 %v394_v47, %v331_v39  ;;  %v412_v3 = vadd.f32 %v410_v52, %v331_v39  ;;  %v338_v9 = vadd.f32 %v331_v39, %v326_v55 }
  0xa7   : > { %v336_v41 = vpop.permute.xlu1 %335  ;;  %v324_v42 = vpop.permute.xlu0 %323 }
  0xa8   : > { %v369_v59 = vmul.f32 %v859_v51, %v324_v42  ;;  %v395_v1 = vmul.f32 %v861_v53, %v324_v42  ;;  %v411_v8 = vmul.f32 %v863_v60, %v324_v42  ;;  %v327_v13 = vmul.f32 %v324_v42, %v294_v0 }
  0xaa   : > { %v371_v16 = vadd.f32 %v369_v59, %v336_v41  ;;  %v397_v20 = vadd.f32 %v395_v1, %v336_v41  ;;  %v339_v32 = vadd.f32 %v336_v41, %v327_v13  ;;  %v413_v33 = vadd.f32 %v411_v8, %v336_v41 }
  0xab   : > { %v348_v48 = vpop.permute.xlu1 %347  ;;  %v343_v49 = vpop.permute.xlu0 %342 }
  0xac   : > { %v350_v2 = vmul.f32 %v858_v43, %v343_v49  ;;  %v386_v4 = vmul.f32 %v860_v44, %v343_v49  ;;  %v402_v5 = vmul.f32 %v862_v45, %v343_v49  ;;  %v351_v18 = vmul.f32 %v859_v51, %v348_v48 }
  0xad   : > { %v387_v19 = vmul.f32 %v861_v53, %v348_v48  ;;  %v403_v26 = vmul.f32 %v863_v60, %v348_v48 }
  0xae   : > { %v352_v25 = vadd.f32 %v350_v2, %v338_v9  ;;  %v353_v40 = vadd.f32 %v351_v18, %v339_v32 }
  0xaf   : > { %v375_v54 = vpop.permute.xlu1 %374  ;;  %v1197_v58 = vpop.permute.xlu0 %358 }
  0xb0   : > { %v382_v61 = vmul.f32 %v375_v54, %v293_v50  ;;  %v398_v62 = vmul.f32 %v858_v43, %v375_v54  ;;  %v414_v63 = vmul.f32 %v860_v44, %v375_v54  ;;  %v1207_v39 = vmax.f32 %v352_v25, 0.0 }
  0xb1   : > { %v1221_v54 = vmax.f32 %v353_v40, 0.0 }
  0xb2   : > { %v384_v6 = vadd.f32 %v382_v61, %v370_v56  ;;  %v400_v7 = vadd.f32 %v398_v62, %v396_v57  ;;  %v416_v10 = vadd.f32 %v414_v63, %v412_v3 }
  0xb3   : > { %v440_v11 = vpop.permute.xlu1 %439  ;;  %v380_v12 = vpop.permute.xlu0 %379 }
  0xb4   : > { %v388_v14 = vadd.f32 %v386_v4, %v384_v6  ;;  %v404_v15 = vadd.f32 %v402_v5, %v400_v7  ;;  %v383_v17 = vmul.f32 %v380_v12, %v294_v0  ;;  %v399_v21 = vmul.f32 %v859_v51, %v380_v12 }
  0xb5   : > { %v415_v24 = vmul.f32 %v861_v53, %v380_v12  ;;  %v1203_v27 = vmax.f32 %v416_v10, 0.0  ;;  %v447_v50 = vmul.f32 %v440_v11, %v1207_v39 }
  0xb6   : > { %v1199_v22 = vmax.f32 %v388_v14, 0.0  ;;  %v1201_v23 = vmax.f32 %v404_v15, 0.0  ;;  %v385_v28 = vadd.f32 %v383_v17, %v371_v16  ;;  %v401_v29 = vadd.f32 %v399_v21, %v397_v20 }
  0xb7   : > { %v452_v30 = vpop.permute.xlu1 %451  ;;  %v445_v31 = vpop.permute.xlu0 %444  ;;  %v417_v38 = vadd.f32 %v415_v24, %v413_v33  ;;  %v537_v42 = vmul.f32 %v440_v11, %v1203_v27 }
  0xb8   : > { %v491_v34 = vmul.f32 %v440_v11, %v1199_v22  ;;  %v389_v35 = vadd.f32 %v387_v19, %v385_v28  ;;  %v405_v36 = vadd.f32 %v403_v26, %v401_v29  ;;  %v519_v37 = vmul.f32 %v440_v11, %v1201_v23 }
  0xb9   : > { %v1218_v51 = vmax.f32 %v417_v38, 0.0  ;;  %v539_v55 = vadd.f32 %v537_v42, %v452_v30  ;;  %v459_v60 = vadd.f32 %v452_v30, %v447_v50  ;;  %v448_v5 = vmul.f32 %v445_v31, %v1221_v54 }
  0xba   : > { %v1210_v43 = vmax.f32 %v389_v35, 0.0  ;;  %v1212_v44 = vmax.f32 %v405_v36, 0.0  ;;  %v493_v48 = vadd.f32 %v491_v34, %v452_v30  ;;  %v521_v52 = vadd.f32 %v519_v37, %v452_v30 }
  0xbb   : > { %v498_v45 = vpop.permute.xlu1 %497  ;;  %v457_v46 = vpop.permute.xlu0 %456  ;;  %v538_v10 = vmul.f32 %v445_v31, %v1218_v51  ;;  %v1252_v42 = vmul.f32 %v1203_v27, %v1197_v58  ;;  %v1265_v50 = vmul.f32 %v1201_v23, %v1197_v58 }
  0xbc   : > { %v505_v41 = vmul.f32 %v498_v45, %v1207_v39  ;;  %v523_v47 = vmul.f32 %v498_v45, %v1199_v22  ;;  %v492_v49 = vmul.f32 %v445_v31, %v1210_v43  ;;  %v520_v53 = vmul.f32 %v445_v31, %v1212_v44 }
  0xbd   : > { %v541_v57 = vmul.f32 %v498_v45, %v1201_v23  ;;  %v460_v13 = vadd.f32 %v457_v46, %v448_v5  ;;  %v540_v26 = vadd.f32 %v538_v10, %v457_v46 }
  0xbe   : > { %v507_v56 = vadd.f32 %v505_v41, %v493_v48  ;;  %v525_v62 = vadd.f32 %v523_v47, %v521_v52  ;;  %v494_v2 = vadd.f32 %v492_v49, %v457_v46  ;;  %v522_v6 = vadd.f32 %v520_v53, %v457_v46 }
  0xbf   : > { %v464_v59 = vpop.permute.xlu1 %463  ;;  %v503_v61 = vpop.permute.xlu0 %502  ;;  %v543_v14 = vadd.f32 %v541_v57, %v539_v55  ;;  %v1257_v48 = vmul.f32 %v1197_v58, %v1207_v39  ;;  %v1261_v49 = vmul.f32 %v1199_v22, %v1197_v58 }
  0xc0   : > { %v471_v63 = vmul.f32 %v464_v59, %v1199_v22  ;;  %v509_v0 = vmul.f32 %v464_v59, %v1201_v23  ;;  %v527_v1 = vmul.f32 %v464_v59, %v1203_v27  ;;  %v506_v3 = vmul.f32 %v503_v61, %v1221_v54 }
  0xc1   : > { %v524_v4 = vmul.f32 %v503_v61, %v1210_v43  ;;  %v542_v17 = vmul.f32 %v503_v61, %v1212_v44  ;;  %v1241_v33 = vmax.f32 %v543_v14, 0.0 }
  0xc2   : > { %v473_v7 = vadd.f32 %v471_v63, %v459_v60  ;;  %v511_v8 = vadd.f32 %v509_v0, %v507_v56  ;;  %v529_v9 = vadd.f32 %v527_v1, %v525_v62  ;;  %v508_v15 = vadd.f32 %v506_v3, %v494_v2 }
  0xc3   : > { %v569_v11 = vpop.permute.xlu1 %568  ;;  %v469_v12 = vpop.permute.xlu0 %468  ;;  %v526_v16 = vadd.f32 %v524_v4, %v522_v6  ;;  %v544_v34 = vadd.f32 %v542_v17, %v540_v26 }
  0xc4   : > { %v1232_v18 = vmax.f32 %v511_v8, 0.0  ;;  %v472_v19 = vmul.f32 %v469_v12, %v1210_v43  ;;  %v510_v20 = vmul.f32 %v469_v12, %v1212_v44  ;;  %v528_v21 = vmul.f32 %v469_v12, %v1218_v51 }
  0xc5   : > { %v1237_v24 = vmax.f32 %v473_v7, 0.0  ;;  %v1239_v25 = vmax.f32 %v529_v9, 0.0  ;;  %v666_v45 = vmul.f32 %v569_v11, %v1241_v33  ;;  %v546_v53 = vmax.f32 %v544_v34, 0.0 }
  0xc6   : > { %v474_v28 = vadd.f32 %v472_v19, %v460_v13  ;;  %v512_v29 = vadd.f32 %v510_v20, %v508_v15  ;;  %v530_v30 = vadd.f32 %v528_v21, %v526_v16  ;;  %v620_v35 = vmul.f32 %v569_v11, %v1232_v18 }
  0xc7   : > { %v581_v31 = vpop.permute.xlu1 %580  ;;  %v574_v32 = vpop.permute.xlu0 %573  ;;  %v576_v36 = vmul.f32 %v569_v11, %v1237_v24  ;;  %v648_v37 = vmul.f32 %v569_v11, %v1239_v25 }
  0xc8   : > { %v1246_v38 = vmax.f32 %v512_v29, 0.0  ;;  %v1248_v40 = vmax.f32 %v530_v30, 0.0  ;;  %v476_v46 = vmax.f32 %v474_v28, 0.0  ;;  %v622_v55 = vadd.f32 %v620_v35, %v581_v31 }
  0xc9   : > { %v668_v56 = vadd.f32 %v666_v45, %v581_v31  ;;  %v588_v59 = vadd.f32 %v581_v31, %v576_v36  ;;  %v650_v39 = vadd.f32 %v648_v37, %v581_v31  ;;  %v667_v62 = vmul.f32 %v574_v32, %v546_v53 }
  0xca   : > { %v621_v60 = vmul.f32 %v574_v32, %v1246_v38  ;;  %v649_v22 = vmul.f32 %v574_v32, %v1248_v40  ;;  %v577_v61 = vmul.f32 %v574_v32, %v476_v46 }
  0xcb   : > { %v627_v41 = vpop.permute.xlu1 %626  ;;  %v586_v47 = vpop.permute.xlu0 %585 }
  0xcc   : > { %v634_v27 = vmul.f32 %v627_v41, %v1237_v24  ;;  %v670_v52 = vmul.f32 %v627_v41, %v1239_v25  ;;  %v652_v57 = vmul.f32 %v627_v41, %v1232_v18  ;;  %v669_v6 = vadd.f32 %v667_v62, %v586_v47 }
  0xcd   : > { %v623_v9 = vadd.f32 %v621_v60, %v586_v47  ;;  %v651_v10 = vadd.f32 %v649_v22, %v586_v47  ;;  %v589_v13 = vadd.f32 %v586_v47, %v577_v61 }
  0xce   : > { %v636_v63 = vadd.f32 %v634_v27, %v622_v55  ;;  %v1272_v58 = vadd.f32 %v670_v52, %v668_v56  ;;  %v654_v5 = vadd.f32 %v652_v57, %v650_v39 }
  0xcf   : > { %v593_v23 = vpop.permute.xlu1 %592  ;;  %v632_v0 = vpop.permute.xlu0 %631 }
  0xd0   : > { %v600_v1 = vmul.f32 %v593_v23, %v1232_v18  ;;  %v638_v2 = vmul.f32 %v593_v23, %v1239_v25  ;;  %v656_v3 = vmul.f32 %v593_v23, %v1241_v33  ;;  %v635_v4 = vmul.f32 %v632_v0, %v476_v46 }
  0xd1   : > { %v653_v7 = vmul.f32 %v632_v0, %v1246_v38  ;;  %v671_v8 = vmul.f32 %v632_v0, %v1248_v40  ;;  %v674_v19 = vmax.f32 %v1272_v58, 0.0 }
  0xd2   : > { %v602_v11 = vadd.f32 %v600_v1, %v588_v59  ;;  %v640_v12 = vadd.f32 %v638_v2, %v636_v63  ;;  %v658_v14 = vadd.f32 %v656_v3, %v654_v5  ;;  %v637_v20 = vadd.f32 %v635_v4, %v623_v9 }
  0xd3   : > { %v673_v15 = vadd.f32 %v671_v8, %v669_v6  ;;  %v364_v16 = vpop.permute.xlu1 %363  ;;  %v598_v17 = vpop.permute.xlu0 %597  ;;  %v655_v21 = vadd.f32 %v653_v7, %v651_v10 }
  0xd4   : > { %v367_v26 = vmul.f32 %v364_v16, %v1221_v54  ;;  %v393_v28 = vmul.f32 %v1210_v43, %v364_v16  ;;  %v409_v29 = vmul.f32 %v1212_v44, %v364_v16  ;;  %v601_v30 = vmul.f32 %v598_v17, %v1246_v38 }
  0xd5   : > { %v639_v31 = vmul.f32 %v598_v17, %v1248_v40  ;;  %v657_v32 = vmul.f32 %v598_v17, %v546_v53  ;;  %v421_v34 = vmul.f32 %v1218_v51, %v364_v16  ;;  %v675_v35 = vmax.f32 %v673_v15, 0.0 }
  0xd6   : > { %v604_v36 = vmax.f32 %v602_v11, 0.0  ;;  %v642_v37 = vmax.f32 %v640_v12, 0.0  ;;  %v603_v45 = vadd.f32 %v601_v30, %v589_v13  ;;  %v660_v54 = vmax.f32 %v658_v14, 0.0 }
  0xd7   : > { %v641_v41 = vadd.f32 %v639_v31, %v637_v20  ;;  %v659_v47 = vadd.f32 %v657_v32, %v655_v21  ;;  %v485_v27 = vpop.permute.xlu1 %484  ;;  %v480_v52 = vpop.permute.xlu0 %479 }
  0xd8   : > { %v488_v55 = vmul.f32 %v485_v27, %v476_v46  ;;  %v516_v43 = vmul.f32 %v1246_v38, %v485_v27  ;;  %v534_v44 = vmul.f32 %v1248_v40, %v485_v27  ;;  %v548_v56 = vmul.f32 %v546_v53, %v485_v27 }
  0xd9   : > { %v487_v57 = vmul.f32 %v480_v52, %v1237_v24  ;;  %v515_v59 = vmul.f32 %v1232_v18, %v480_v52  ;;  %v533_v51 = vmul.f32 %v1239_v25, %v480_v52  ;;  %v547_v39 = vmul.f32 %v1241_v33, %v480_v52 }
  0xda   : > { %v490_v60 = vadd.f32 %v488_v55, %v367_v26  ;;  %v518_v22 = vadd.f32 %v516_v43, %v393_v28  ;;  %v536_v61 = vadd.f32 %v534_v44, %v409_v29  ;;  %v550_v62 = vadd.f32 %v548_v56, %v421_v34 }
  0xdb   : > { %v614_v63 = vpop.permute.xlu1 %613  ;;  %v605_v58 = vmax.f32 %v603_v45, 0.0  ;;  %v643_v46 = vmax.f32 %v641_v41, 0.0  ;;  %v661_v23 = vmax.f32 %v659_v47, 0.0  ;;  %v609_v38 = vpop.permute.xlu0 %608  ;;  %v489_v40 = vadd.f32 %v487_v57, %v1257_v48 }
  0xdc   : > { %v677_v53 = vmul.f32 %v675_v35, %v614_v63  ;;  %v517_v24 = vadd.f32 %v515_v59, %v1261_v49  ;;  %v535_v18 = vadd.f32 %v533_v51, %v1265_v50  ;;  %v549_v25 = vadd.f32 %v547_v39, %v1252_v42 }
  0xdd   : > { %v617_v33 = vmul.f32 %v614_v63, %v605_v58  ;;  %v645_v0 = vmul.f32 %v643_v46, %v614_v63  ;;  %v663_v1 = vmul.f32 %v661_v23, %v614_v63  ;;  %v616_v2 = vmul.f32 %v609_v38, %v604_v36 }
  0xde   : > { %v679_v3 = vadd.f32 %v677_v53, %v550_v62  ;;  %v644_v4 = vmul.f32 %v642_v37, %v609_v38  ;;  %v662_v5 = vmul.f32 %v660_v54, %v609_v38  ;;  %v676_v6 = vmul.f32 %v674_v19, %v609_v38 }
  0xdf   : > { %v619_v7 = vadd.f32 %v617_v33, %v490_v60  ;;  %v647_v8 = vadd.f32 %v645_v0, %v518_v22  ;;  %v665_v9 = vadd.f32 %v663_v1, %v536_v61  ;;  %v618_v48 = vadd.f32 %v616_v2, %v489_v40 }
  0xe0   : > { %893 = vst [vmem:[%s287_s15 + $0x38] sm:$0xff] %v679_v3  ;;  %v646_v10 = vadd.f32 %v644_v4, %v517_v24  ;;  %v664_v49 = vadd.f32 %v662_v5, %v535_v18  ;;  %v678_v11 = vadd.f32 %v676_v6, %v549_v25  ;;  %697 = sbr.rel (!%p1089_p6) target bundleno = 237 (0xed), region = 78 }
  0xe1   : > { %681 = vst [vmem:[%s287_s15 + $0x8] sm:$0xff] %v619_v7  ;;  %889 = vst [vmem:[%s287_s15 + $0x18] sm:$0xff] %v647_v8 }
  0xe2   : > { %891 = vst [vmem:[%s287_s15 + $0x28] sm:$0xff] %v665_v9  ;;  %680 = vst [vmem:[%s287_s15] sm:$0xff] %v618_v48 }
  0xe3   : > { %888 = vst [vmem:[%s287_s15 + $0x10] sm:$0xff] %v646_v10  ;;  %890 = vst [vmem:[%s287_s15 + $0x20] sm:$0xff] %v664_v49 }
  0xe4   : > { %892 = vst [vmem:[%s287_s15 + $0x30] sm:$0xff] %v678_v11 }
  0xe7   : > { %v758_v17 = vld [vmem:[%s287_s15 + $0x38] sm:$0xff] }
  0xe8   : > { %v746_v50 = vld [vmem:[%s287_s15 + $0x8] sm:$0xff]  ;;  %v750_v13 = vld [vmem:[%s287_s15 + $0x18] sm:$0xff]  ;;  %759 = vst [vmem:[%s701_s27 + $0x70] sm:$0xff] %v758_v17 }
  0xe9   : > { %v744_v42 = vld [vmem:[%s287_s15] sm:$0xff]  ;;  %v754_v15 = vld [vmem:[%s287_s15 + $0x28] sm:$0xff]  ;;  %747 = vst [vmem:[%s701_s27 + $0x10] sm:$0xff] %v746_v50  ;;  %751 = vst [vmem:[%s701_s27 + $0x30] sm:$0xff] %v750_v13 }
  0xea   : > { %v748_v12 = vld [vmem:[%s287_s15 + $0x10] sm:$0xff]  ;;  %v752_v14 = vld [vmem:[%s287_s15 + $0x20] sm:$0xff]  ;;  %745 = vst [vmem:[%s701_s27] sm:$0xff] %v744_v42  ;;  %755 = vst [vmem:[%s701_s27 + $0x50] sm:$0xff] %v754_v15 }
  0xeb   : > { %v756_v16 = vld [vmem:[%s287_s15 + $0x30] sm:$0xff]  ;;  %749 = vst [vmem:[%s701_s27 + $0x20] sm:$0xff] %v748_v12  ;;  %753 = vst [vmem:[%s701_s27 + $0x40] sm:$0xff] %v752_v14 }
  0xec   : > { %757 = vst [vmem:[%s701_s27 + $0x60] sm:$0xff] %v756_v16 }
  0xed PF: > { %s14_s21 = sadd.s32 1, %s1013_s21   ;;  %s1331_s15 = smov %s993_s16 }
  0xee   : > { %p11_p13 = scmp.ge.s32.totalorder %s14_s21, 6   ;;  %s1332_s16 = smov %s1097_s30 }
  0xef   : > { %s1333_s17 = smov %s1005_s19  ;;  %s1334_s18 = smov %s1009_s20 }
  0xf0   : > { %s1335_s19 = smov %s1338_s22  ;;  %s1336_s20 = smov %s1342_s23 }
  0xf1   :  { %13 = sbr.rel (!%p11_p13) target bundleno = 4 (0x4), region = 168 }

</bundles_post_ra>
